<compile_context>
chip_gen: v7x
topology: tpu7x:2x2x1
jax: 0.10.0
libtpu: 0.0.40
codegen_flags: <defaults>
</compile_context>

<pallas_src>
import jax
import jax.numpy as jnp
from jax import lax
from jax.experimental import pallas as pl
from jax.experimental.pallas import tpu as pltpu

_LANE = 128
_SUBLANE = 8
_VMEM_TABLE_BUDGET = 8 * 1024 * 1024    # f32 table must fit comfortably in VMEM
_VMEM_RESIDENT_BUDGET = 48 * 1024 * 1024
_VMEM_LIMIT_BYTES = 64 * 1024 * 1024    # explicit scoped-VMEM budget (v7x-safe)


def _round_up(n, m):
    return ((n + m - 1) // m) * m


def _make_mlp_kernel(n_layers, batch_tile, seq_len, vocab):
    TB, S, V = batch_tile, seq_len, vocab
    inv_s = 1.0 / float(S)

    def kernel(ids_ref, emb_ref, *rest):
        # rest = (w_0, b_0, ..., w_{L-1}, b_{L-1}, out_ref, acc_ref)
        wbs = rest[: 2 * n_layers]
        out_ref = rest[2 * n_layers]
        acc_ref = rest[2 * n_layers + 1]

        E_pad = emb_ref.shape[1]
        base = pl.program_id(0) * (TB * S)

        # ---- 1) Embedding gather + mean pool --------------------------------
        # ids live in 1-D SMEM (scalar prefetch); each token row is a dynamic
        # VMEM read from the resident table (no DMA).  The sequence mean is
        # accumulated per batch row straight into the (TB, E_pad) scratch.
        def row_body(r, carry):
            def seq_body(s, acc_row):
                tok = ids_ref[base + r * S + s]
                tok = jnp.clip(tok, 0, V - 1)          # OOB guard
                return acc_row + emb_ref[pl.ds(tok, 1), :]

            row_sum = lax.fori_loop(
                0, S, seq_body, jnp.zeros((1, E_pad), jnp.float32),
                unroll=(S <= 16))
            acc_ref[pl.ds(r, 1), :] = row_sum * inv_s
            return carry

        lax.fori_loop(0, TB, row_body, 0)

        # ---- 2) Linear -> ReLU stack: bf16 MXU operands, f32 accumulation ---
        x = acc_ref[...]
        for l in range(n_layers):
            w_ref, b_ref = wbs[2 * l], wbs[2 * l + 1]
            x = jnp.dot(x.astype(jnp.bfloat16), w_ref[...],
                        preferred_element_type=jnp.float32) + b_ref[...]
            if l < n_layers - 1:
                x = jnp.maximum(x, 0.0)

        out_ref[...] = x  # lane-dense (TB, 128k) f32 store

    return kernel


def mlp_forward(input_ids, emb, weights, biases, *, batch_tile=None):
    """weights[l] is [d_in, d_out] (transposed vs. PyTorch), biases[l] is [1, d_out]."""
    B, S = input_ids.shape
    V, E = emb.shape
    n_layers = len(weights)
    C = weights[-1].shape[1]

    # Lane-dense padding: every feature dim -> multiple of 128 (zeros).
    # (On v6e, 256-multiples avoid partial MXU passes; 128 is correct everywhere.)
    feat = [E] + [w.shape[1] for w in weights]
    fpad = [_round_up(d, _LANE) for d in feat]
    V_pad = _round_up(V, _SUBLANE)

    table_bytes = V_pad * fpad[0] * 4
    if table_bytes > _VMEM_TABLE_BUDGET:
        # TODO(synk): large-vocab path (SMEM dedup + per-unique-row HBM DMA)
        # not implemented.
        raise ValueError(
            f"embedding table ({table_bytes} B) exceeds the VMEM-resident budget")

    emb_p = jnp.pad(emb.astype(jnp.float32), ((0, V_pad - V), (0, fpad[0] - E)))
    packed, wb_shapes = [], []
    for l, (w, b) in enumerate(zip(weights, biases)):
        wp = jnp.pad(w.astype(jnp.float32),
                     ((0, fpad[l] - w.shape[0]), (0, fpad[l + 1] - w.shape[1])))
        bp = jnp.pad(b.reshape(1, -1).astype(jnp.float32),
                     ((0, 0), (0, fpad[l + 1] - b.shape[-1])))
        packed += [wp.astype(jnp.bfloat16), bp]
        wb_shapes += [(fpad[l], fpad[l + 1]), (1, fpad[l + 1])]

    # ---- batch tile: MXU-shaped (up to 128; pass 256 on v6e/v7x), and keep
    # >=2 grid steps when the batch allows it (v7x has 2 TensorCores).
    if batch_tile is None:
        TB = min(128, _round_up(B, _SUBLANE))
        if B >= 2 * _SUBLANE and _round_up(B, TB) // TB < 2:
            TB = _round_up(pl.cdiv(B, 2), _SUBLANE)
    else:
        TB = max(_SUBLANE, _round_up(min(batch_tile, B), _SUBLANE))
    B_pad = _round_up(B, TB)

    # Rough VMEM residency sanity check (x2: conservative for double-buffering).
    resident = (table_bytes
                + sum(i * o * 2 + o * 4 for i, o in zip(fpad[:-1], fpad[1:]))
                + TB * fpad[0] * 4 + 2 * TB * fpad[-1] * 4)
    if 2 * resident > _VMEM_RESIDENT_BUDGET:
        # TODO(synk): tile the largest layer's N/K (or stream its weight with
        # pltpu.emit_pipeline) for configs that do not fit v7x's 64 MiB VMEM.
        raise ValueError("resident weights/table exceed the VMEM budget")

    ids = input_ids.astype(jnp.int32)
    if B_pad != B:
        ids = jnp.pad(ids, ((0, B_pad - B), (0, 0)))  # pad rows read token 0; sliced off
    ids_flat = ids.reshape(-1)  # 1-D SMEM: pads to pow2 bytes, not to 128 lanes

    kernel = _make_mlp_kernel(n_layers, TB, S, V)

    def build(single_buffer):
        pm = dict(pipeline_mode=pl.Buffered(1)) if single_buffer else {}
        emb_spec = pl.BlockSpec((V_pad, fpad[0]), lambda i, ids_ref: (0, 0), **pm)
        wb_specs = [pl.BlockSpec(shp, lambda i, ids_ref: (0, 0), **pm)
                    for shp in wb_shapes]
        return pl.pallas_call(
            kernel,
            out_shape=jax.ShapeDtypeStruct((B_pad, fpad[-1]), jnp.float32),
            grid_spec=pltpu.PrefetchScalarGridSpec(
                num_scalar_prefetch=1,                    # ids -> SMEM
                grid=(B_pad // TB,),
                in_specs=[emb_spec] + wb_specs,           # all VMEM-resident
                out_specs=pl.BlockSpec((TB, fpad[-1]), lambda i, ids_ref: (i, 0)),
                scratch_shapes=[pltpu.VMEM((TB, fpad[0]), jnp.float32)],
            ),
            compiler_params=pltpu.CompilerParams(
                dimension_semantics=("parallel",),        # megacore batch split
                vmem_limit_bytes=_VMEM_LIMIT_BYTES,
            ),
        )

    try:
        out = build(True)(ids_flat, emb_p, *packed)
    except Exception:
        # Fallback for JAX versions that reject pipeline_mode=pl.Buffered(1).
        out = build(False)(ids_flat, emb_p, *packed)

    return out[:B, :C]


def init_params(key, vocab_size, embed_dim, hidden_dims, num_classes):
    """Deterministic init matching PyTorch defaults:
    Embedding ~ N(0,1); Linear W,b ~ U(-1/sqrt(fan_in), 1/sqrt(fan_in))."""
    keys = jax.random.split(key, 1 + 2 * (len(hidden_dims) + 1))
    emb = jax.random.normal(keys[0], (vocab_size, embed_dim), jnp.float32)

    dims = [embed_dim] + list(hidden_dims) + [num_classes]
    weights, biases = [], []
    ki = 1
    for d_in, d_out in zip(dims[:-1], dims[1:]):
        bound = 1.0 / (d_in ** 0.5)
        w = jax.random.uniform(keys[ki], (d_in, d_out), jnp.float32,
                               minval=-bound, maxval=bound)
        b = jax.random.uniform(keys[ki + 1], (1, d_out), jnp.float32,
                               minval=-bound, maxval=bound)
        weights.append(w)
        biases.append(b)
        ki += 2
    return emb, weights, biases


def reference_forward(input_ids, emb, weights, biases):
    """Mirrors the kernel's numerics: f32 gather+mean, bf16 matmul operands,
    f32 accumulation and f32 bias/ReLU."""
    x = jnp.mean(jnp.take(emb, input_ids, axis=0), axis=1)
    n = len(weights)
    for l, (w, b) in enumerate(zip(weights, biases)):
        x = jnp.dot(x.astype(jnp.bfloat16), w.astype(jnp.bfloat16),
                    preferred_element_type=jnp.float32) + b
        if l < n - 1:
            x = jnp.maximum(x, 0.0)
    return x


if __name__ == "__main__":
    # Small shapes consistent with the module's forward.
    vocab_size, embed_dim = 32, 32
    hidden_dims = [64, 32]
    num_classes = 8
    batch, seq = 8, 8

    key = jax.random.PRNGKey(0)
    k_ids, k_params = jax.random.split(key)

    input_ids = jax.random.randint(k_ids, (batch, seq), 0, vocab_size,
                                   dtype=jnp.int32)
    emb, weights, biases = init_params(k_params, vocab_size, embed_dim,
                                       hidden_dims, num_classes)

    logits = mlp_forward(input_ids, emb, weights, biases)
    logits = jax.block_until_ready(logits)

    ref = reference_forward(input_ids, emb, weights, biases)
    assert logits.shape == (batch, num_classes)
    assert jnp.allclose(logits, ref, atol=2e-3, rtol=2e-3), (
        f"max abs diff {jnp.max(jnp.abs(logits - ref))}")

    print("KERNEL_OK")
</pallas_src>

<mosaic_0001>
module attributes {stable_mosaic.version = 11 : i64} {
  func.func @kernel(%arg0: i32, %arg1: memref<64xi32, #tpu.memory_space<smem>>, %arg2: memref<32x128xf32, #tpu.memory_space<vmem>>, %arg3: memref<128x128xbf16, #tpu.memory_space<vmem>>, %arg4: memref<1x128xf32, #tpu.memory_space<vmem>>, %arg5: memref<128x128xbf16, #tpu.memory_space<vmem>>, %arg6: memref<1x128xf32, #tpu.memory_space<vmem>>, %arg7: memref<128x128xbf16, #tpu.memory_space<vmem>>, %arg8: memref<1x128xf32, #tpu.memory_space<vmem>>, %arg9: memref<8x128xf32, #tpu.memory_space<vmem>>, %arg10: memref<8x128xf32, #tpu.memory_space<vmem>>) attributes {dimension_semantics = [#tpu.dimension_semantics<parallel>], iteration_bounds = array<i64: 1>, scalar_prefetch = 1 : i64, scratch_operands = 1 : i64, tpu.core_type = #tpu.core_type<tc>, window_params = [{pipeline_mode = #tpu.pipeline_mode<synchronous>, transform_indices = @transform_0, window_bounds = array<i64: 32, 128>}, {pipeline_mode = #tpu.pipeline_mode<synchronous>, transform_indices = @transform_1, window_bounds = array<i64: 128, 128>}, {pipeline_mode = #tpu.pipeline_mode<synchronous>, transform_indices = @transform_2, window_bounds = array<i64: 1, 128>}, {pipeline_mode = #tpu.pipeline_mode<synchronous>, transform_indices = @transform_3, window_bounds = array<i64: 128, 128>}, {pipeline_mode = #tpu.pipeline_mode<synchronous>, transform_indices = @transform_4, window_bounds = array<i64: 1, 128>}, {pipeline_mode = #tpu.pipeline_mode<synchronous>, transform_indices = @transform_5, window_bounds = array<i64: 128, 128>}, {pipeline_mode = #tpu.pipeline_mode<synchronous>, transform_indices = @transform_6, window_bounds = array<i64: 1, 128>}, {transform_indices = @transform_7, window_bounds = array<i64: 8, 128>}]} {
    %c64_i32 = arith.constant 64 : i32
    %0 = arith.muli %arg0, %c64_i32 : i32
    %c0_i32 = arith.constant 0 : i32
    %c8_i32 = arith.constant 8 : i32
    %1 = arith.addi %c0_i32, %c8_i32 : i32
    %c1_i32 = arith.constant 1 : i32
    scf.for %arg11 = %c0_i32 to %1 step %c1_i32  : i32 {
      %cst_20 = arith.constant 0.000000e+00 : f32
      %26 = vector.broadcast %cst_20 : f32 to vector<1x128xf32>
      %c0_i32_21 = arith.constant 0 : i32
      %c8_i32_22 = arith.constant 8 : i32
      %27 = arith.muli %arg11, %c8_i32_22 : i32
      %28 = arith.addi %0, %27 : i32
      %29 = arith.addi %28, %c0_i32_21 : i32
      %30 = arith.index_cast %29 : i32 to index
      %31 = memref.load %arg1[%30] : memref<64xi32, #tpu.memory_space<smem>>
      %c0_i32_23 = arith.constant 0 : i32
      %c31_i32 = arith.constant 31 : i32
      %32 = arith.maxsi %c0_i32_23, %31 : i32
      %33 = arith.minsi %c31_i32, %32 : i32
      %34 = arith.index_cast %33 : i32 to index
      %c0_24 = arith.constant 0 : index
      %35 = vector.load %arg2[%34, %c0_24] : memref<32x128xf32, #tpu.memory_space<vmem>>, vector<1x128xf32>
      %36 = arith.addf %26, %35 : vector<1x128xf32>
      %c1_i32_25 = arith.constant 1 : i32
      %c8_i32_26 = arith.constant 8 : i32
      %37 = arith.muli %arg11, %c8_i32_26 : i32
      %38 = arith.addi %0, %37 : i32
      %39 = arith.addi %38, %c1_i32_25 : i32
      %40 = arith.index_cast %39 : i32 to index
      %41 = memref.load %arg1[%40] : memref<64xi32, #tpu.memory_space<smem>>
      %c0_i32_27 = arith.constant 0 : i32
      %c31_i32_28 = arith.constant 31 : i32
      %42 = arith.maxsi %c0_i32_27, %41 : i32
      %43 = arith.minsi %c31_i32_28, %42 : i32
      %44 = arith.index_cast %43 : i32 to index
      %c0_29 = arith.constant 0 : index
      %45 = vector.load %arg2[%44, %c0_29] : memref<32x128xf32, #tpu.memory_space<vmem>>, vector<1x128xf32>
      %46 = arith.addf %36, %45 : vector<1x128xf32>
      %c2_i32 = arith.constant 2 : i32
      %c8_i32_30 = arith.constant 8 : i32
      %47 = arith.muli %arg11, %c8_i32_30 : i32
      %48 = arith.addi %0, %47 : i32
      %49 = arith.addi %48, %c2_i32 : i32
      %50 = arith.index_cast %49 : i32 to index
      %51 = memref.load %arg1[%50] : memref<64xi32, #tpu.memory_space<smem>>
      %c0_i32_31 = arith.constant 0 : i32
      %c31_i32_32 = arith.constant 31 : i32
      %52 = arith.maxsi %c0_i32_31, %51 : i32
      %53 = arith.minsi %c31_i32_32, %52 : i32
      %54 = arith.index_cast %53 : i32 to index
      %c0_33 = arith.constant 0 : index
      %55 = vector.load %arg2[%54, %c0_33] : memref<32x128xf32, #tpu.memory_space<vmem>>, vector<1x128xf32>
      %56 = arith.addf %46, %55 : vector<1x128xf32>
      %c3_i32 = arith.constant 3 : i32
      %c8_i32_34 = arith.constant 8 : i32
      %57 = arith.muli %arg11, %c8_i32_34 : i32
      %58 = arith.addi %0, %57 : i32
      %59 = arith.addi %58, %c3_i32 : i32
      %60 = arith.index_cast %59 : i32 to index
      %61 = memref.load %arg1[%60] : memref<64xi32, #tpu.memory_space<smem>>
      %c0_i32_35 = arith.constant 0 : i32
      %c31_i32_36 = arith.constant 31 : i32
      %62 = arith.maxsi %c0_i32_35, %61 : i32
      %63 = arith.minsi %c31_i32_36, %62 : i32
      %64 = arith.index_cast %63 : i32 to index
      %c0_37 = arith.constant 0 : index
      %65 = vector.load %arg2[%64, %c0_37] : memref<32x128xf32, #tpu.memory_space<vmem>>, vector<1x128xf32>
      %66 = arith.addf %56, %65 : vector<1x128xf32>
      %c4_i32 = arith.constant 4 : i32
      %c8_i32_38 = arith.constant 8 : i32
      %67 = arith.muli %arg11, %c8_i32_38 : i32
      %68 = arith.addi %0, %67 : i32
      %69 = arith.addi %68, %c4_i32 : i32
      %70 = arith.index_cast %69 : i32 to index
      %71 = memref.load %arg1[%70] : memref<64xi32, #tpu.memory_space<smem>>
      %c0_i32_39 = arith.constant 0 : i32
      %c31_i32_40 = arith.constant 31 : i32
      %72 = arith.maxsi %c0_i32_39, %71 : i32
      %73 = arith.minsi %c31_i32_40, %72 : i32
      %74 = arith.index_cast %73 : i32 to index
      %c0_41 = arith.constant 0 : index
      %75 = vector.load %arg2[%74, %c0_41] : memref<32x128xf32, #tpu.memory_space<vmem>>, vector<1x128xf32>
      %76 = arith.addf %66, %75 : vector<1x128xf32>
      %c5_i32 = arith.constant 5 : i32
      %c8_i32_42 = arith.constant 8 : i32
      %77 = arith.muli %arg11, %c8_i32_42 : i32
      %78 = arith.addi %0, %77 : i32
      %79 = arith.addi %78, %c5_i32 : i32
      %80 = arith.index_cast %79 : i32 to index
      %81 = memref.load %arg1[%80] : memref<64xi32, #tpu.memory_space<smem>>
      %c0_i32_43 = arith.constant 0 : i32
      %c31_i32_44 = arith.constant 31 : i32
      %82 = arith.maxsi %c0_i32_43, %81 : i32
      %83 = arith.minsi %c31_i32_44, %82 : i32
      %84 = arith.index_cast %83 : i32 to index
      %c0_45 = arith.constant 0 : index
      %85 = vector.load %arg2[%84, %c0_45] : memref<32x128xf32, #tpu.memory_space<vmem>>, vector<1x128xf32>
      %86 = arith.addf %76, %85 : vector<1x128xf32>
      %c6_i32 = arith.constant 6 : i32
      %c8_i32_46 = arith.constant 8 : i32
      %87 = arith.muli %arg11, %c8_i32_46 : i32
      %88 = arith.addi %0, %87 : i32
      %89 = arith.addi %88, %c6_i32 : i32
      %90 = arith.index_cast %89 : i32 to index
      %91 = memref.load %arg1[%90] : memref<64xi32, #tpu.memory_space<smem>>
      %c0_i32_47 = arith.constant 0 : i32
      %c31_i32_48 = arith.constant 31 : i32
      %92 = arith.maxsi %c0_i32_47, %91 : i32
      %93 = arith.minsi %c31_i32_48, %92 : i32
      %94 = arith.index_cast %93 : i32 to index
      %c0_49 = arith.constant 0 : index
      %95 = vector.load %arg2[%94, %c0_49] : memref<32x128xf32, #tpu.memory_space<vmem>>, vector<1x128xf32>
      %96 = arith.addf %86, %95 : vector<1x128xf32>
      %c7_i32 = arith.constant 7 : i32
      %c8_i32_50 = arith.constant 8 : i32
      %97 = arith.muli %arg11, %c8_i32_50 : i32
      %98 = arith.addi %0, %97 : i32
      %99 = arith.addi %98, %c7_i32 : i32
      %100 = arith.index_cast %99 : i32 to index
      %101 = memref.load %arg1[%100] : memref<64xi32, #tpu.memory_space<smem>>
      %c0_i32_51 = arith.constant 0 : i32
      %c31_i32_52 = arith.constant 31 : i32
      %102 = arith.maxsi %c0_i32_51, %101 : i32
      %103 = arith.minsi %c31_i32_52, %102 : i32
      %104 = arith.index_cast %103 : i32 to index
      %c0_53 = arith.constant 0 : index
      %105 = vector.load %arg2[%104, %c0_53] : memref<32x128xf32, #tpu.memory_space<vmem>>, vector<1x128xf32>
      %106 = arith.addf %96, %105 : vector<1x128xf32>
      %c8_i32_54 = arith.constant 8 : i32
      %cst_55 = arith.constant 1.250000e-01 : f32
      %107 = vector.broadcast %cst_55 : f32 to vector<1x128xf32>
      %108 = arith.mulf %106, %107 : vector<1x128xf32>
      %109 = arith.index_cast %arg11 : i32 to index
      %c0_56 = arith.constant 0 : index
      %110 = vector.load %arg10[%109, %c0_56] : memref<8x128xf32, #tpu.memory_space<vmem>>, vector<1x128xf32>
      tpu.vector_store %arg10[%109, %c0_56], %108 {strides = array<i32>} : memref<8x128xf32, #tpu.memory_space<vmem>>, vector<1x128xf32>,
    }
    %c8_i32_0 = arith.constant 8 : i32
    %c0 = arith.constant 0 : index
    %c0_1 = arith.constant 0 : index
    %2 = vector.load %arg10[%c0, %c0_1] : memref<8x128xf32, #tpu.memory_space<vmem>>, vector<8x128xf32>
    %3 = arith.truncf %2 : vector<8x128xf32> to vector<8x128xbf16>
    %c0_2 = arith.constant 0 : index
    %c0_3 = arith.constant 0 : index
    %4 = vector.load %arg3[%c0_2, %c0_3] : memref<128x128xbf16, #tpu.memory_space<vmem>>, vector<128x128xbf16>
    %cst = arith.constant dense<0.000000e+00> : vector<8x128xf32>
    %5 = tpu.matmul %3, %4, %cst {dimension_numbers = #tpu.dot_dimension_numbers<[1], [0], [0], [1], [0, 0, 1, 1], [], []>} : vector<8x128xbf16>, vector<128x128xbf16>, vector<8x128xf32> -> vector<8x128xf32>
    %c0_4 = arith.constant 0 : index
    %c0_5 = arith.constant 0 : index
    %6 = vector.load %arg4[%c0_4, %c0_5] : memref<1x128xf32, #tpu.memory_space<vmem>>, vector<1x128xf32>
    %7 = vector.broadcast %6 : vector<1x128xf32> to vector<8x128xf32>
    %8 = arith.addf %5, %7 : vector<8x128xf32>
    %cst_6 = arith.constant 0.000000e+00 : f32
    %9 = vector.broadcast %cst_6 : f32 to vector<8x128xf32>
    %10 = arith.maximumf %8, %9 : vector<8x128xf32>
    %11 = arith.truncf %10 : vector<8x128xf32> to vector<8x128xbf16>
    %c0_7 = arith.constant 0 : index
    %c0_8 = arith.constant 0 : index
    %12 = vector.load %arg5[%c0_7, %c0_8] : memref<128x128xbf16, #tpu.memory_space<vmem>>, vector<128x128xbf16>
    %cst_9 = arith.constant dense<0.000000e+00> : vector<8x128xf32>
    %13 = tpu.matmul %11, %12, %cst_9 {dimension_numbers = #tpu.dot_dimension_numbers<[1], [0], [0], [1], [0, 0, 1, 1], [], []>} : vector<8x128xbf16>, vector<128x128xbf16>, vector<8x128xf32> -> vector<8x128xf32>
    %c0_10 = arith.constant 0 : index
    %c0_11 = arith.constant 0 : index
    %14 = vector.load %arg6[%c0_10, %c0_11] : memref<1x128xf32, #tpu.memory_space<vmem>>, vector<1x128xf32>
    %15 = vector.broadcast %14 : vector<1x128xf32> to vector<8x128xf32>
    %16 = arith.addf %13, %15 : vector<8x128xf32>
    %cst_12 = arith.constant 0.000000e+00 : f32
    %17 = vector.broadcast %cst_12 : f32 to vector<8x128xf32>
    %18 = arith.maximumf %16, %17 : vector<8x128xf32>
    %19 = arith.truncf %18 : vector<8x128xf32> to vector<8x128xbf16>
    %c0_13 = arith.constant 0 : index
    %c0_14 = arith.constant 0 : index
    %20 = vector.load %arg7[%c0_13, %c0_14] : memref<128x128xbf16, #tpu.memory_space<vmem>>, vector<128x128xbf16>
    %cst_15 = arith.constant dense<0.000000e+00> : vector<8x128xf32>
    %21 = tpu.matmul %19, %20, %cst_15 {dimension_numbers = #tpu.dot_dimension_numbers<[1], [0], [0], [1], [0, 0, 1, 1], [], []>} : vector<8x128xbf16>, vector<128x128xbf16>, vector<8x128xf32> -> vector<8x128xf32>
    %c0_16 = arith.constant 0 : index
    %c0_17 = arith.constant 0 : index
    %22 = vector.load %arg8[%c0_16, %c0_17] : memref<1x128xf32, #tpu.memory_space<vmem>>, vector<1x128xf32>
    %23 = vector.broadcast %22 : vector<1x128xf32> to vector<8x128xf32>
    %24 = arith.addf %21, %23 : vector<8x128xf32>
    %c0_18 = arith.constant 0 : index
    %c0_19 = arith.constant 0 : index
    %25 = vector.load %arg9[%c0_18, %c0_19] : memref<8x128xf32, #tpu.memory_space<vmem>>, vector<8x128xf32>
    tpu.vector_store %arg9[%c0_18, %c0_19], %24 {strides = array<i32>} : memref<8x128xf32, #tpu.memory_space<vmem>>, vector<8x128xf32>,
    return
  }
  func.func @transform_0(%arg0: i32, %arg1: memref<64xi32, #tpu.memory_space<smem>>) -> (i32, i32) {
    %c0_i32 = arith.constant 0 : i32
    %c0_i32_0 = arith.constant 0 : i32
    %c0_i32_1 = arith.constant 0 : i32
    return %c0_i32, %c0_i32_0 : i32, i32
  }
  func.func @transform_1(%arg0: i32, %arg1: memref<64xi32, #tpu.memory_space<smem>>) -> (i32, i32) {
    %c0_i32 = arith.constant 0 : i32
    %c0_i32_0 = arith.constant 0 : i32
    %c0_i32_1 = arith.constant 0 : i32
    return %c0_i32, %c0_i32_0 : i32, i32
  }
  func.func @transform_2(%arg0: i32, %arg1: memref<64xi32, #tpu.memory_space<smem>>) -> (i32, i32) {
    %c0_i32 = arith.constant 0 : i32
    %c0_i32_0 = arith.constant 0 : i32
    %c0_i32_1 = arith.constant 0 : i32
    return %c0_i32, %c0_i32_0 : i32, i32
  }
  func.func @transform_3(%arg0: i32, %arg1: memref<64xi32, #tpu.memory_space<smem>>) -> (i32, i32) {
    %c0_i32 = arith.constant 0 : i32
    %c0_i32_0 = arith.constant 0 : i32
    %c0_i32_1 = arith.constant 0 : i32
    return %c0_i32, %c0_i32_0 : i32, i32
  }
  func.func @transform_4(%arg0: i32, %arg1: memref<64xi32, #tpu.memory_space<smem>>) -> (i32, i32) {
    %c0_i32 = arith.constant 0 : i32
    %c0_i32_0 = arith.constant 0 : i32
    %c0_i32_1 = arith.constant 0 : i32
    return %c0_i32, %c0_i32_0 : i32, i32
  }
  func.func @transform_5(%arg0: i32, %arg1: memref<64xi32, #tpu.memory_space<smem>>) -> (i32, i32) {
    %c0_i32 = arith.constant 0 : i32
    %c0_i32_0 = arith.constant 0 : i32
    %c0_i32_1 = arith.constant 0 : i32
    return %c0_i32, %c0_i32_0 : i32, i32
  }
  func.func @transform_6(%arg0: i32, %arg1: memref<64xi32, #tpu.memory_space<smem>>) -> (i32, i32) {
    %c0_i32 = arith.constant 0 : i32
    %c0_i32_0 = arith.constant 0 : i32
    %c0_i32_1 = arith.constant 0 : i32
    return %c0_i32, %c0_i32_0 : i32, i32
  }
  func.func @transform_7(%arg0: i32, %arg1: memref<64xi32, #tpu.memory_space<smem>>) -> (i32, i32) {
    %c0_i32 = arith.constant 0 : i32
    %c0_i32_0 = arith.constant 0 : i32
    return %arg0, %c0_i32 : i32, i32
  }
}

module attributes {stable_mosaic.version = 11 : i64} {
  func.func @kernel(%arg0: i32, %arg1: memref<64xi32, #tpu.memory_space<smem>>, %arg2: memref<32x128xf32, #tpu.memory_space<vmem>>, %arg3: memref<128x128xbf16, #tpu.memory_space<vmem>>, %arg4: memref<1x128xf32, #tpu.memory_space<vmem>>, %arg5: memref<128x128xbf16, #tpu.memory_space<vmem>>, %arg6: memref<1x128xf32, #tpu.memory_space<vmem>>, %arg7: memref<128x128xbf16, #tpu.memory_space<vmem>>, %arg8: memref<1x128xf32, #tpu.memory_space<vmem>>, %arg9: memref<8x128xf32, #tpu.memory_space<vmem>>, %arg10: memref<8x128xf32, #tpu.memory_space<vmem>>) attributes {dimension_semantics = [#tpu.dimension_semantics<parallel>], iteration_bounds = array<i64: 1>, scalar_prefetch = 1 : i64, scratch_operands = 1 : i64, tpu.core_type = #tpu.core_type<tc>, window_params = [{pipeline_mode = #tpu.pipeline_mode<synchronous>, transform_indices = @transform_0, window_bounds = array<i64: 32, 128>}, {pipeline_mode = #tpu.pipeline_mode<synchronous>, transform_indices = @transform_1, window_bounds = array<i64: 128, 128>}, {pipeline_mode = #tpu.pipeline_mode<synchronous>, transform_indices = @transform_2, window_bounds = array<i64: 1, 128>}, {pipeline_mode = #tpu.pipeline_mode<synchronous>, transform_indices = @transform_3, window_bounds = array<i64: 128, 128>}, {pipeline_mode = #tpu.pipeline_mode<synchronous>, transform_indices = @transform_4, window_bounds = array<i64: 1, 128>}, {pipeline_mode = #tpu.pipeline_mode<synchronous>, transform_indices = @transform_5, window_bounds = array<i64: 128, 128>}, {pipeline_mode = #tpu.pipeline_mode<synchronous>, transform_indices = @transform_6, window_bounds = array<i64: 1, 128>}, {transform_indices = @transform_7, window_bounds = array<i64: 8, 128>}]} {
    %c64_i32 = arith.constant 64 : i32
    %0 = arith.muli %arg0, %c64_i32 : i32
    %c0_i32 = arith.constant 0 : i32
    %c8_i32 = arith.constant 8 : i32
    %1 = arith.addi %c0_i32, %c8_i32 : i32
    %c1_i32 = arith.constant 1 : i32
    scf.for %arg11 = %c0_i32 to %1 step %c1_i32  : i32 {
      %cst_20 = arith.constant 0.000000e+00 : f32
      %26 = vector.broadcast %cst_20 : f32 to vector<1x128xf32>
      %c0_i32_21 = arith.constant 0 : i32
      %c8_i32_22 = arith.constant 8 : i32
      %27 = arith.muli %arg11, %c8_i32_22 : i32
      %28 = arith.addi %0, %27 : i32
      %29 = arith.addi %28, %c0_i32_21 : i32
      %30 = arith.index_cast %29 : i32 to index
      %31 = memref.load %arg1[%30] : memref<64xi32, #tpu.memory_space<smem>>
      %c0_i32_23 = arith.constant 0 : i32
      %c31_i32 = arith.constant 31 : i32
      %32 = arith.maxsi %c0_i32_23, %31 : i32
      %33 = arith.minsi %c31_i32, %32 : i32
      %34 = arith.index_cast %33 : i32 to index
      %c0_24 = arith.constant 0 : index
      %35 = vector.load %arg2[%34, %c0_24] : memref<32x128xf32, #tpu.memory_space<vmem>>, vector<1x128xf32>
      %36 = arith.addf %26, %35 : vector<1x128xf32>
      %c1_i32_25 = arith.constant 1 : i32
      %c8_i32_26 = arith.constant 8 : i32
      %37 = arith.muli %arg11, %c8_i32_26 : i32
      %38 = arith.addi %0, %37 : i32
      %39 = arith.addi %38, %c1_i32_25 : i32
      %40 = arith.index_cast %39 : i32 to index
      %41 = memref.load %arg1[%40] : memref<64xi32, #tpu.memory_space<smem>>
      %c0_i32_27 = arith.constant 0 : i32
      %c31_i32_28 = arith.constant 31 : i32
      %42 = arith.maxsi %c0_i32_27, %41 : i32
      %43 = arith.minsi %c31_i32_28, %42 : i32
      %44 = arith.index_cast %43 : i32 to index
      %c0_29 = arith.constant 0 : index
      %45 = vector.load %arg2[%44, %c0_29] : memref<32x128xf32, #tpu.memory_space<vmem>>, vector<1x128xf32>
      %46 = arith.addf %36, %45 : vector<1x128xf32>
      %c2_i32 = arith.constant 2 : i32
      %c8_i32_30 = arith.constant 8 : i32
      %47 = arith.muli %arg11, %c8_i32_30 : i32
      %48 = arith.addi %0, %47 : i32
      %49 = arith.addi %48, %c2_i32 : i32
      %50 = arith.index_cast %49 : i32 to index
      %51 = memref.load %arg1[%50] : memref<64xi32, #tpu.memory_space<smem>>
      %c0_i32_31 = arith.constant 0 : i32
      %c31_i32_32 = arith.constant 31 : i32
      %52 = arith.maxsi %c0_i32_31, %51 : i32
      %53 = arith.minsi %c31_i32_32, %52 : i32
      %54 = arith.index_cast %53 : i32 to index
      %c0_33 = arith.constant 0 : index
      %55 = vector.load %arg2[%54, %c0_33] : memref<32x128xf32, #tpu.memory_space<vmem>>, vector<1x128xf32>
      %56 = arith.addf %46, %55 : vector<1x128xf32>
      %c3_i32 = arith.constant 3 : i32
      %c8_i32_34 = arith.constant 8 : i32
      %57 = arith.muli %arg11, %c8_i32_34 : i32
      %58 = arith.addi %0, %57 : i32
      %59 = arith.addi %58, %c3_i32 : i32
      %60 = arith.index_cast %59 : i32 to index
      %61 = memref.load %arg1[%60] : memref<64xi32, #tpu.memory_space<smem>>
      %c0_i32_35 = arith.constant 0 : i32
      %c31_i32_36 = arith.constant 31 : i32
      %62 = arith.maxsi %c0_i32_35, %61 : i32
      %63 = arith.minsi %c31_i32_36, %62 : i32
      %64 = arith.index_cast %63 : i32 to index
      %c0_37 = arith.constant 0 : index
      %65 = vector.load %arg2[%64, %c0_37] : memref<32x128xf32, #tpu.memory_space<vmem>>, vector<1x128xf32>
      %66 = arith.addf %56, %65 : vector<1x128xf32>
      %c4_i32 = arith.constant 4 : i32
      %c8_i32_38 = arith.constant 8 : i32
      %67 = arith.muli %arg11, %c8_i32_38 : i32
      %68 = arith.addi %0, %67 : i32
      %69 = arith.addi %68, %c4_i32 : i32
      %70 = arith.index_cast %69 : i32 to index
      %71 = memref.load %arg1[%70] : memref<64xi32, #tpu.memory_space<smem>>
      %c0_i32_39 = arith.constant 0 : i32
      %c31_i32_40 = arith.constant 31 : i32
      %72 = arith.maxsi %c0_i32_39, %71 : i32
      %73 = arith.minsi %c31_i32_40, %72 : i32
      %74 = arith.index_cast %73 : i32 to index
      %c0_41 = arith.constant 0 : index
      %75 = vector.load %arg2[%74, %c0_41] : memref<32x128xf32, #tpu.memory_space<vmem>>, vector<1x128xf32>
      %76 = arith.addf %66, %75 : vector<1x128xf32>
      %c5_i32 = arith.constant 5 : i32
      %c8_i32_42 = arith.constant 8 : i32
      %77 = arith.muli %arg11, %c8_i32_42 : i32
      %78 = arith.addi %0, %77 : i32
      %79 = arith.addi %78, %c5_i32 : i32
      %80 = arith.index_cast %79 : i32 to index
      %81 = memref.load %arg1[%80] : memref<64xi32, #tpu.memory_space<smem>>
      %c0_i32_43 = arith.constant 0 : i32
      %c31_i32_44 = arith.constant 31 : i32
      %82 = arith.maxsi %c0_i32_43, %81 : i32
      %83 = arith.minsi %c31_i32_44, %82 : i32
      %84 = arith.index_cast %83 : i32 to index
      %c0_45 = arith.constant 0 : index
      %85 = vector.load %arg2[%84, %c0_45] : memref<32x128xf32, #tpu.memory_space<vmem>>, vector<1x128xf32>
      %86 = arith.addf %76, %85 : vector<1x128xf32>
      %c6_i32 = arith.constant 6 : i32
      %c8_i32_46 = arith.constant 8 : i32
      %87 = arith.muli %arg11, %c8_i32_46 : i32
      %88 = arith.addi %0, %87 : i32
      %89 = arith.addi %88, %c6_i32 : i32
      %90 = arith.index_cast %89 : i32 to index
      %91 = memref.load %arg1[%90] : memref<64xi32, #tpu.memory_space<smem>>
      %c0_i32_47 = arith.constant 0 : i32
      %c31_i32_48 = arith.constant 31 : i32
      %92 = arith.maxsi %c0_i32_47, %91 : i32
      %93 = arith.minsi %c31_i32_48, %92 : i32
      %94 = arith.index_cast %93 : i32 to index
      %c0_49 = arith.constant 0 : index
      %95 = vector.load %arg2[%94, %c0_49] : memref<32x128xf32, #tpu.memory_space<vmem>>, vector<1x128xf32>
      %96 = arith.addf %86, %95 : vector<1x128xf32>
      %c7_i32 = arith.constant 7 : i32
      %c8_i32_50 = arith.constant 8 : i32
      %97 = arith.muli %arg11, %c8_i32_50 : i32
      %98 = arith.addi %0, %97 : i32
      %99 = arith.addi %98, %c7_i32 : i32
      %100 = arith.index_cast %99 : i32 to index
      %101 = memref.load %arg1[%100] : memref<64xi32, #tpu.memory_space<smem>>
      %c0_i32_51 = arith.constant 0 : i32
      %c31_i32_52 = arith.constant 31 : i32
      %102 = arith.maxsi %c0_i32_51, %101 : i32
      %103 = arith.minsi %c31_i32_52, %102 : i32
      %104 = arith.index_cast %103 : i32 to index
      %c0_53 = arith.constant 0 : index
      %105 = vector.load %arg2[%104, %c0_53] : memref<32x128xf32, #tpu.memory_space<vmem>>, vector<1x128xf32>
      %106 = arith.addf %96, %105 : vector<1x128xf32>
      %c8_i32_54 = arith.constant 8 : i32
      %cst_55 = arith.constant 1.250000e-01 : f32
      %107 = vector.broadcast %cst_55 : f32 to vector<1x128xf32>
      %108 = arith.mulf %106, %107 : vector<1x128xf32>
      %109 = arith.index_cast %arg11 : i32 to index
      %c0_56 = arith.constant 0 : index
      %110 = vector.load %arg10[%109, %c0_56] : memref<8x128xf32, #tpu.memory_space<vmem>>, vector<1x128xf32>
      tpu.vector_store %arg10[%109, %c0_56], %108 {strides = array<i32>} : memref<8x128xf32, #tpu.memory_space<vmem>>, vector<1x128xf32>,
    }
    %c8_i32_0 = arith.constant 8 : i32
    %c0 = arith.constant 0 : index
    %c0_1 = arith.constant 0 : index
    %2 = vector.load %arg10[%c0, %c0_1] : memref<8x128xf32, #tpu.memory_space<vmem>>, vector<8x128xf32>
    %3 = arith.truncf %2 : vector<8x128xf32> to vector<8x128xbf16>
    %c0_2 = arith.constant 0 : index
    %c0_3 = arith.constant 0 : index
    %4 = vector.load %arg3[%c0_2, %c0_3] : memref<128x128xbf16, #tpu.memory_space<vmem>>, vector<128x128xbf16>
    %cst = arith.constant dense<0.000000e+00> : vector<8x128xf32>
    %5 = tpu.matmul %3, %4, %cst {dimension_numbers = #tpu.dot_dimension_numbers<[1], [0], [0], [1], [0, 0, 1, 1], [], []>} : vector<8x128xbf16>, vector<128x128xbf16>, vector<8x128xf32> -> vector<8x128xf32>
    %c0_4 = arith.constant 0 : index
    %c0_5 = arith.constant 0 : index
    %6 = vector.load %arg4[%c0_4, %c0_5] : memref<1x128xf32, #tpu.memory_space<vmem>>, vector<1x128xf32>
    %7 = vector.broadcast %6 : vector<1x128xf32> to vector<8x128xf32>
    %8 = arith.addf %5, %7 : vector<8x128xf32>
    %cst_6 = arith.constant 0.000000e+00 : f32
    %9 = vector.broadcast %cst_6 : f32 to vector<8x128xf32>
    %10 = arith.maximumf %8, %9 : vector<8x128xf32>
    %11 = arith.truncf %10 : vector<8x128xf32> to vector<8x128xbf16>
    %c0_7 = arith.constant 0 : index
    %c0_8 = arith.constant 0 : index
    %12 = vector.load %arg5[%c0_7, %c0_8] : memref<128x128xbf16, #tpu.memory_space<vmem>>, vector<128x128xbf16>
    %cst_9 = arith.constant dense<0.000000e+00> : vector<8x128xf32>
    %13 = tpu.matmul %11, %12, %cst_9 {dimension_numbers = #tpu.dot_dimension_numbers<[1], [0], [0], [1], [0, 0, 1, 1], [], []>} : vector<8x128xbf16>, vector<128x128xbf16>, vector<8x128xf32> -> vector<8x128xf32>
    %c0_10 = arith.constant 0 : index
    %c0_11 = arith.constant 0 : index
    %14 = vector.load %arg6[%c0_10, %c0_11] : memref<1x128xf32, #tpu.memory_space<vmem>>, vector<1x128xf32>
    %15 = vector.broadcast %14 : vector<1x128xf32> to vector<8x128xf32>
    %16 = arith.addf %13, %15 : vector<8x128xf32>
    %cst_12 = arith.constant 0.000000e+00 : f32
    %17 = vector.broadcast %cst_12 : f32 to vector<8x128xf32>
    %18 = arith.maximumf %16, %17 : vector<8x128xf32>
    %19 = arith.truncf %18 : vector<8x128xf32> to vector<8x128xbf16>
    %c0_13 = arith.constant 0 : index
    %c0_14 = arith.constant 0 : index
    %20 = vector.load %arg7[%c0_13, %c0_14] : memref<128x128xbf16, #tpu.memory_space<vmem>>, vector<128x128xbf16>
    %cst_15 = arith.constant dense<0.000000e+00> : vector<8x128xf32>
    %21 = tpu.matmul %19, %20, %cst_15 {dimension_numbers = #tpu.dot_dimension_numbers<[1], [0], [0], [1], [0, 0, 1, 1], [], []>} : vector<8x128xbf16>, vector<128x128xbf16>, vector<8x128xf32> -> vector<8x128xf32>
    %c0_16 = arith.constant 0 : index
    %c0_17 = arith.constant 0 : index
    %22 = vector.load %arg8[%c0_16, %c0_17] : memref<1x128xf32, #tpu.memory_space<vmem>>, vector<1x128xf32>
    %23 = vector.broadcast %22 : vector<1x128xf32> to vector<8x128xf32>
    %24 = arith.addf %21, %23 : vector<8x128xf32>
    %c0_18 = arith.constant 0 : index
    %c0_19 = arith.constant 0 : index
    %25 = vector.load %arg9[%c0_18, %c0_19] : memref<8x128xf32, #tpu.memory_space<vmem>>, vector<8x128xf32>
    tpu.vector_store %arg9[%c0_18, %c0_19], %24 {strides = array<i32>} : memref<8x128xf32, #tpu.memory_space<vmem>>, vector<8x128xf32>,
    return
  }
  func.func @transform_0(%arg0: i32, %arg1: memref<64xi32, #tpu.memory_space<smem>>) -> (i32, i32) {
    %c0_i32 = arith.constant 0 : i32
    %c0_i32_0 = arith.constant 0 : i32
    %c0_i32_1 = arith.constant 0 : i32
    return %c0_i32, %c0_i32_0 : i32, i32
  }
  func.func @transform_1(%arg0: i32, %arg1: memref<64xi32, #tpu.memory_space<smem>>) -> (i32, i32) {
    %c0_i32 = arith.constant 0 : i32
    %c0_i32_0 = arith.constant 0 : i32
    %c0_i32_1 = arith.constant 0 : i32
    return %c0_i32, %c0_i32_0 : i32, i32
  }
  func.func @transform_2(%arg0: i32, %arg1: memref<64xi32, #tpu.memory_space<smem>>) -> (i32, i32) {
    %c0_i32 = arith.constant 0 : i32
    %c0_i32_0 = arith.constant 0 : i32
    %c0_i32_1 = arith.constant 0 : i32
    return %c0_i32, %c0_i32_0 : i32, i32
  }
  func.func @transform_3(%arg0: i32, %arg1: memref<64xi32, #tpu.memory_space<smem>>) -> (i32, i32) {
    %c0_i32 = arith.constant 0 : i32
    %c0_i32_0 = arith.constant 0 : i32
    %c0_i32_1 = arith.constant 0 : i32
    return %c0_i32, %c0_i32_0 : i32, i32
  }
  func.func @transform_4(%arg0: i32, %arg1: memref<64xi32, #tpu.memory_space<smem>>) -> (i32, i32) {
    %c0_i32 = arith.constant 0 : i32
    %c0_i32_0 = arith.constant 0 : i32
    %c0_i32_1 = arith.constant 0 : i32
    return %c0_i32, %c0_i32_0 : i32, i32
  }
  func.func @transform_5(%arg0: i32, %arg1: memref<64xi32, #tpu.memory_space<smem>>) -> (i32, i32) {
    %c0_i32 = arith.constant 0 : i32
    %c0_i32_0 = arith.constant 0 : i32
    %c0_i32_1 = arith.constant 0 : i32
    return %c0_i32, %c0_i32_0 : i32, i32
  }
  func.func @transform_6(%arg0: i32, %arg1: memref<64xi32, #tpu.memory_space<smem>>) -> (i32, i32) {
    %c0_i32 = arith.constant 0 : i32
    %c0_i32_0 = arith.constant 0 : i32
    %c0_i32_1 = arith.constant 0 : i32
    return %c0_i32, %c0_i32_0 : i32, i32
  }
  func.func @transform_7(%arg0: i32, %arg1: memref<64xi32, #tpu.memory_space<smem>>) -> (i32, i32) {
    %c0_i32 = arith.constant 0 : i32
    %c0_i32_0 = arith.constant 0 : i32
    return %arg0, %c0_i32 : i32, i32
  }
}

</mosaic_0001>

<bundles_post_ra>
// kernel: tpu_custom_call.1
= control target key start
LH: loop header
LB: loop body
LE: loop exit
PB: predicated region body
PF: predicated region fallthrough
CT: control target
= control target key end

     0   :  { %s1240_s0 = inlined_call_operand.hbm [shape: s32[64], index: 0, kind: input, shape index: {}]   ;;  %s1241_s1 = inlined_call_operand.hbm [shape: f32[32,128], index: 1, kind: input, shape index: {}]   ;;  %s1242_s2 = inlined_call_operand.hbm [shape: bf16[128,128], index: 2, kind: input, shape index: {}]   ;;  %s1243_s3 = inlined_call_operand.hbm [shape: f32[1,128], index: 3, kind: input, shape index: {}]   ;;  %s1244_s4 = inlined_call_operand.hbm [shape: bf16[128,128], index: 4, kind: input, shape index: {}]   ;;  %s1245_s5 = inlined_call_operand.hbm [shape: f32[1,128], index: 5, kind: input, shape index: {}]   ;;  %s1246_s6 = inlined_call_operand.hbm [shape: bf16[128,128], index: 6, kind: input, shape index: {}]   ;;  %s1247_s7 = inlined_call_operand.hbm [shape: f32[1,128], index: 7, kind: input, shape index: {}]   ;;  %s1248_s8 = inlined_call_operand.hbm [shape: f32[8,128], index: 8, kind: output, shape index: {}]  }
   0x1   :  { %s795_s29 = scalar_lea.hbm %s1240_s0, 16 }
   0x2   :  { %p796_p0 = scmp.ne.s32.totalorder %s1240_s0, %s795_s29  ;;  %p799_p1 = scmp.lt.u32.totalorder %s795_s29, %s1240_s0 }
   0x4   :  { %p801_p2 = pnand %p799_p1, %p796_p0 }
   0x6   :  { %804 = shalt.err (!%p801_p2)  }
   0x7   :  { %s1001_s12 = smov [#allocation4]  }
   0x8   :  { %14 = dma.hbm_to_smem %s1240_s0, 16, %s1001_s12, [#allocation3] }
   0x9   :  { %985 = dma.done.wait [#allocation3], 16 }
   0xa   :  { %986 = vsyncadd [#allocation3], 4294967280 }
   0xb   :  { %16 = sfence }
   0xc   :  { %17 = vsyncpa [#allocation6], 0 }
   0xd   :  { %18 = vsyncpa [#allocation9], 0 }
   0xe   :  { %19 = vsyncpa [#allocation12], 0 }
   0xf   :  { %20 = vsyncpa [#allocation15], 0 }
  0x10   :  { %21 = vsyncpa [#allocation7], 0  ;;  %s1002_s15 = smov [#allocation8]   ;;  %s805_s19 = scalar_lea.hbm %s1242_s2, 1024 }
  0x11   :  { %s39_s16 = sshll.u32 %s1002_s15, 4  ;;  %p806_p3 = scmp.ne.s32.totalorder %s1242_s2, %s805_s19  ;;  %s40_s16 = int_to_ptr.vmem [resolvable:$true] %s39_s16 }
  0x12   :  { %p809_p4 = scmp.lt.u32.totalorder %s805_s19, %s1242_s2 }
  0x14   :  { %p811_p5 = pnand %p809_p4, %p806_p3 }
  0x16   :  { %814 = shalt.err (!%p811_p5)
}
  0x17   :  { %s815_s23 = scalar_lea.vmem %s40_s16, 1024  ;;  %p820_p7 = scmp.lt.s32.totalorder %s40_s16, %s40_s16 }
  0x18   :  { %p816_p6 = scmp.ne.s32.totalorder %s40_s16, %s815_s23  ;;  %p821_p8 = scmp.lt.s32.totalorder %s815_s23, %s815_s23 }
  0x1a   :  { %p822_p9 = por %p821_p8, %p820_p7 }
  0x1c   :  { %p823_p10 = pnand %p822_p9, %p816_p6 }
  0x1e   :  { %826 = shalt.err (!%p823_p10)
}
  0x1f   :  { %s1003_s24 = smov 64   ;;  %s1004_s25 = smov 4  }
  0x20   :  { %45 = dma.hbm_to_vmem [thread:$0]  %s1242_s2, 1024, %s40_s16, [#allocation9], %s1003_s24, %s1003_s24, %s1004_s25  }
  0x21   :  { %s1005_s28 = smov [#allocation11]   ;;  %s1006_s30 = smov [#allocation14]  }
  0x22   :  { %s61_s29 = sshll.u32 %s1005_s28, 4  ;;  %s83_s9 = sshll.u32 %s1006_s30, 4  ;;  %s62_s29 = int_to_ptr.vmem [resolvable:$true] %s61_s29  ;;  %s84_s9 = int_to_ptr.vmem [resolvable:$true] %s83_s9 }
  0x23   :  { %s827_s12 = scalar_lea.hbm %s1244_s4, 1024 }
  0x24   :  { %p828_p11 = scmp.ne.s32.totalorder %s1244_s4, %s827_s12  ;;  %p831_p12 = scmp.lt.u32.totalorder %s827_s12, %s1244_s4 }
  0x26   :  { %p833_p13 = pnand %p831_p12, %p828_p11 }
  0x28   :  { %836 = shalt.err (!%p833_p13)
}
  0x29   :  { %s837_s2 = scalar_lea.vmem %s62_s29, 1024  ;;  %p842_p1 = scmp.lt.s32.totalorder %s62_s29, %s62_s29 }
  0x2a   :  { %p838_p0 = scmp.ne.s32.totalorder %s62_s29, %s837_s2  ;;  %p843_p2 = scmp.lt.s32.totalorder %s837_s2, %s837_s2 }
  0x2c   :  { %p844_p3 = por %p843_p2, %p842_p1 }
  0x2e   :  { %p845_p4 = pnand %p844_p3, %p838_p0 }
  0x30   :  { %848 = shalt.err (!%p845_p4)
}
  0x31   :  { %67 = dma.hbm_to_vmem [thread:$0]  %s1244_s4, 1024, %s62_s29, [#allocation12], %s1003_s24, %s1003_s24, %s1004_s25  }
  0x32   :  { %s849_s21 = scalar_lea.hbm %s1246_s6, 1024 }
  0x33   :  { %p850_p5 = scmp.ne.s32.totalorder %s1246_s6, %s849_s21  ;;  %p853_p6 = scmp.lt.u32.totalorder %s849_s21, %s1246_s6 }
  0x35   :  { %p855_p7 = pnand %p853_p6, %p850_p5 }
  0x37   :  { %858 = shalt.err (!%p855_p7)
}
  0x38   :  { %s859_s27 = scalar_lea.vmem %s84_s9, 1024  ;;  %p864_p9 = scmp.lt.s32.totalorder %s84_s9, %s84_s9 }
  0x39   :  { %p860_p8 = scmp.ne.s32.totalorder %s84_s9, %s859_s27  ;;  %p865_p10 = scmp.lt.s32.totalorder %s859_s27, %s859_s27 }
  0x3b   :  { %p866_p11 = por %p865_p10, %p864_p9 }
  0x3d   :  { %p867_p12 = pnand %p866_p11, %p860_p8 }
  0x3f   :  { %870 = shalt.err (!%p867_p12)
}
  0x40   :  { %89 = dma.hbm_to_vmem [thread:$0]  %s1246_s6, 1024, %s84_s9, [#allocation15], %s1003_s24, %s1003_s24, %s1004_s25  }
  0x41   :  { %s1007_s29 = smov [#allocation5]   ;;  %s871_s12 = scalar_lea.hbm %s1241_s1, 512 }
  0x42   :  { %s27_s30 = sshll.u32 %s1007_s29, 4  ;;  %p872_p13 = scmp.ne.s32.totalorder %s1241_s1, %s871_s12  ;;  %s28_s30 = int_to_ptr.vmem [resolvable:$true] %s27_s30 }
  0x43   :  { %p875_p0 = scmp.lt.u32.totalorder %s871_s12, %s1241_s1 }
  0x45   :  { %p877_p1 = pnand %p875_p0, %p872_p13 }
  0x47   :  { %880 = shalt.err (!%p877_p1)
}
  0x48   :  { %s881_s2 = scalar_lea.vmem %s28_s30, 512  ;;  %p886_p3 = scmp.lt.s32.totalorder %s28_s30, %s28_s30 }
  0x49   :  { %p882_p2 = scmp.ne.s32.totalorder %s28_s30, %s881_s2  ;;  %p887_p4 = scmp.lt.s32.totalorder %s881_s2, %s881_s2 }
  0x4b   :  { %p888_p5 = por %p887_p4, %p886_p3 }
  0x4d   :  { %p889_p6 = pnand %p888_p5, %p882_p2 }
  0x4f   :  { %892 = shalt.err (!%p889_p6)
}
  0x50   :  { %s1008_s6 = smov 128   ;;  %s1009_s24 = smov 8  }
  0x51   :  { %33 = dma.hbm_to_vmem [thread:$0]  %s1241_s1, 512, %s28_s30, [#allocation6], %s1008_s6, %s1008_s6, %s1009_s24  }
  0x52   :  { %s1010_s16 = smov [#allocation10]   ;;  %s1011_s19 = smov [#allocation13]  }
  0x53   :  { %s52_s18 = sshll.u32 %s1010_s16, 4  ;;  %s74_s20 = sshll.u32 %s1011_s19, 4  ;;  %s53_s18 = int_to_ptr.vmem [resolvable:$true] %s52_s18  ;;  %s75_s20 = int_to_ptr.vmem [resolvable:$true] %s74_s20 }
  0x54   :  { %s893_s22 = scalar_lea.hbm %s1243_s3, 16 }
  0x55   :  { %p894_p7 = scmp.ne.s32.totalorder %s1243_s3, %s893_s22  ;;  %p897_p8 = scmp.lt.u32.totalorder %s893_s22, %s1243_s3 }
  0x57   :  { %p899_p9 = pnand %p897_p8, %p894_p7 }
  0x59   :  { %902 = shalt.err (!%p899_p9)
}
  0x5a   :  { %s903_s1 = scalar_lea.vmem %s53_s18, 16  ;;  %s907_s28 = scalar_lea.vmem %s53_s18, 32 }
  0x5b   :  { %p904_p10 = scmp.ne.s32.totalorder %s53_s18, %s903_s1  ;;  %p908_p11 = scmp.lt.s32.totalorder %s53_s18, %s53_s18 }
  0x5c   :  { %p909_p12 = scmp.lt.s32.totalorder %s907_s28, %s903_s1 }
  0x5e   :  { %p910_p13 = por %p909_p12, %p908_p11 }
  0x60   :  { %p911_p0 = pnand %p910_p13, %p904_p10 }
  0x62   :  { %914 = shalt.err (!%p911_p0)
}
  0x63   :  { %55 = dma.hbm_to_vmem [thread:$0]  %s1243_s3, 16, %s53_s18, [#allocation9]  }
  0x64   :  { %s915_s12 = scalar_lea.hbm %s1245_s5, 16 }
  0x65   :  { %p916_p1 = scmp.ne.s32.totalorder %s1245_s5, %s915_s12  ;;  %p919_p2 = scmp.lt.u32.totalorder %s915_s12, %s1245_s5 }
  0x67   :  { %p921_p3 = pnand %p919_p2, %p916_p1 }
  0x69   :  { %924 = shalt.err (!%p921_p3)
}
  0x6a   :  { %s925_s2 = scalar_lea.vmem %s75_s20, 16  ;;  %s929_s6 = scalar_lea.vmem %s75_s20, 32 }
  0x6b   :  { %p926_p4 = scmp.ne.s32.totalorder %s75_s20, %s925_s2  ;;  %p930_p5 = scmp.lt.s32.totalorder %s75_s20, %s75_s20 }
  0x6c   :  { %p931_p6 = scmp.lt.s32.totalorder %s929_s6, %s925_s2 }
  0x6e   :  { %p932_p7 = por %p931_p6, %p930_p5 }
  0x70   :  { %p933_p8 = pnand %p932_p7, %p926_p4 }
  0x72   :  { %936 = shalt.err (!%p933_p8)
}
  0x73   :  { %77 = dma.hbm_to_vmem [thread:$0]  %s1245_s5, 16, %s75_s20, [#allocation12]  }
  0x74   :  { %s1012_s25 = smov [#allocation16]   ;;  %s937_s19 = scalar_lea.hbm %s1247_s7, 16 }
  0x75   :  { %s96_s9 = sshll.u32 %s1012_s25, 4  ;;  %p938_p9 = scmp.ne.s32.totalorder %s1247_s7, %s937_s19  ;;  %s97_s9 = int_to_ptr.vmem [resolvable:$true] %s96_s9 }
  0x76   :  { %p941_p10 = scmp.lt.u32.totalorder %s937_s19, %s1247_s7 }
  0x78   :  { %p943_p11 = pnand %p941_p10, %p938_p9 }
  0x7a   :  { %946 = shalt.err (!%p943_p11)
}
  0x7b   :  { %s947_s26 = scalar_lea.vmem %s97_s9, 16  ;;  %s951_s5 = scalar_lea.vmem %s97_s9, 32 }
  0x7c   :  { %p948_p12 = scmp.ne.s32.totalorder %s97_s9, %s947_s26  ;;  %p952_p13 = scmp.lt.s32.totalorder %s97_s9, %s97_s9 }
  0x7d   :  { %p953_p0 = scmp.lt.s32.totalorder %s951_s5, %s947_s26 }
  0x7f   :  { %p954_p1 = por %p953_p0, %p952_p13 }
  0x81   :  { %p955_p2 = pnand %p954_p1, %p948_p12 }
  0x83   :  { %958 = shalt.err (!%p955_p2)
}
  0x84   :  { %99 = dma.hbm_to_vmem [thread:$0]  %s1247_s7, 16, %s97_s9, [#allocation15]  }
  0x85   :  { %987 = dma.done.wait [#allocation6], 512  }
  0x86   :  { %988 = vsyncadd [#allocation6], 4294966784 }
  0x87   :  { %989 = dma.done.wait [#allocation9], 1040  }
  0x88   :  { %990 = vsyncadd [#allocation9], 4294966256 }
  0x89   :  { %991 = dma.done.wait [#allocation12], 1040  }
  0x8a   :  { %992 = vsyncadd [#allocation12], 4294966256 }
  0x8b   :  { %993 = dma.done.wait [#allocation15], 1040  }
  0x8c   :  { %994 = vsyncadd [#allocation15], 4294966256  ;;  %s1166_s4 = smov 0  }
  0x8d LB: > { %s1172_s1 = sshll.u32 %s999_s4, 3  ;;  %s203_s26 = scalar_lea.vmem [#allocation2], %s999_s4  ;;  %s999_s4 = sphi %s1166_s4, %s128_s4  }
  0x8e   : > { %s131_s7 = sld [smem:[#allocation4 + %s1172_s1]]  ;;  %s139_s28 = sadd.s32 1, %s1172_s1 }
  0x8f   : > { %s140_s29 = sld [smem:[#allocation4 + %s139_s28]]  ;;  %s148_s30 = sadd.s32 2, %s1172_s1 }
  0x90   : > { %s149_s10 = sld [smem:[#allocation4 + %s148_s30]]  ;;  %s157_s11 = sadd.s32 3, %s1172_s1 }
  0x91   : > { %s158_s12 = sld [smem:[#allocation4 + %s157_s11]]  ;;  %s166_s13 = sadd.s32 4, %s1172_s1 }
  0x92   : > { %s1179_s14 = sld [smem:[#allocation4 + %s166_s13]]  ;;  %s175_s15 = sadd.s32 5, %s1172_s1 }
  0x93   : > { %s1182_s17 = sld [smem:[#allocation4 + %s175_s15]]  ;;  %s184_s2 = sadd.s32 6, %s1172_s1 }
  0x94   : > { %p132_p3 = scmp.gt.s32.totalorder %s131_s7, 0  ;;  %p578_p4 = scmp.lt.s32.totalorder %s131_s7, 31 }
  0x95   : > { %p141_p5 = scmp.gt.s32.totalorder %s140_s29, 0  ;;  %p583_p6 = scmp.lt.s32.totalorder %s140_s29, 31 }
  0x96   : > { %s1250_s7 = smov (!%p132_p3, %s131_s7), 0  ;;  %p150_p7 = scmp.gt.s32.totalorder %s149_s10, 0 }
  0x97   : > { %s1252_s29 = smov (!%p141_p5, %s140_s29), 0  ;;  %s1254_s7 = smov (!%p578_p4, %s1250_s7), 31 }
  0x98   : > { %s1256_s29 = smov (!%p583_p6, %s1252_s29), 31  ;;  %p588_p8 = scmp.lt.s32.totalorder %s149_s10, 31 }
  0x99   : > { %s1258_s10 = smov (!%p150_p7, %s149_s10), 0  ;;  %p159_p9 = scmp.gt.s32.totalorder %s158_s12, 0 }
  0x9a   : > { %p593_p10 = scmp.lt.s32.totalorder %s158_s12, 31  ;;  %s136_s6 = scalar_lea.vmem [#allocation5], %s1254_s7 }
  0x9b   : > { %v137_v0 = vld [vmem:[%s136_s6] sm:$0x1]  ;;  %s145_s3 = scalar_lea.vmem [#allocation5], %s1256_s29  ;;  %s1260_s10 = smov (!%p588_p8, %s1258_s10), 31 }
  0x9c   : > { %v146_v1 = vld [vmem:[%s145_s3] sm:$0x1]  ;;  %s1262_s12 = smov (!%p159_p9, %s158_s12), 0  ;;  %p168_p11 = scmp.gt.s32.totalorder %s1179_s14, 0 }
  0x9d   : > { %v147_v2 = vadd.f32 %v146_v1, %v137_v0  ;;  %s1264_s12 = smov (!%p593_p10, %s1262_s12), 31  ;;  %s154_s24 = scalar_lea.vmem [#allocation5], %s1260_s10 }
  0x9e   : > { %v155_v3 = vld [vmem:[%s154_s24] sm:$0x1]  ;;  %s169_s25 = scalar_select %p168_p11, %s1179_s14, 0 }
  0x9f   : > { %p598_p12 = scmp.lt.s32.totalorder %s1179_s14, 31  ;;  %p177_p13 = scmp.gt.s32.totalorder %s1182_s17, 0  ;;  %v156_v4 = vadd.f32 %v155_v3, %v147_v2 }
  0xa0   : > { %p603_p0 = scmp.lt.s32.totalorder %s1182_s17, 31  ;;  %s163_s9 = scalar_lea.vmem [#allocation5], %s1264_s12 }
  0xa1   : > { %s1266_s25 = smov (!%p598_p12, %s169_s25), 31  ;;  %v164_v5 = vld [vmem:[%s163_s9] sm:$0x1]  ;;  %s1268_s17 = smov (!%p177_p13, %s1182_s17), 0 }
  0xa2   : > { %s185_s16 = sld [smem:[#allocation4 + %s184_s2]]  ;;  %s1270_s17 = smov (!%p603_p0, %s1268_s17), 31  ;;  %v165_v6 = vadd.f32 %v164_v5, %v156_v4 }
  0xa3   : > { %s193_s18 = sadd.s32 7, %s1172_s1  ;;  %s172_s19 = scalar_lea.vmem [#allocation5], %s1266_s25 }
  0xa4   : > { %v173_v7 = vld [vmem:[%s172_s19] sm:$0x1]  ;;  %s194_s21 = sld [smem:[#allocation4 + %s193_s18]]  ;;  %s181_s0 = scalar_lea.vmem [#allocation5], %s1270_s17 }
  0xa5   : > { %v174_v8 = vadd.f32 %v173_v7, %v165_v6  ;;  %v182_v9 = vld [vmem:[%s181_s0] sm:$0x1]  ;;  %s128_s4 = sadd.s32 1, %s999_s4  }
  0xa6   : > { %p125_p5 = scmp.ge.s32.totalorder %s128_s4, 8  }
  0xa7   : > { %v183_v10 = vadd.f32 %v182_v9, %v174_v8  ;;  %v771_v16 = vld [vmem:[#allocation8] sm:$0xff] (%p125_p5)   ;;  %v1013_v17 = vmov (%p125_p5), 0.0   ;;  %v772_v18 = vld [vmem:[#allocation8 + $0x8] sm:$0xff] (%p125_p5)   ;;  %vm1014_vm0 = vmmov (%p125_p5), 0   ;;  %v773_v19 = vld [vmem:[#allocation8 + $0x10] sm:$0xff] (%p125_p5)   ;;  %s1015_s5 = smov (%p125_p5), [#allocation17]  }
  0xa8   : > { %p186_p1 = scmp.gt.s32.totalorder %s185_s16, 0  ;;  %p608_p2 = scmp.lt.s32.totalorder %s185_s16, 31  ;;  %688 = vmatprep.subr.bf16.mxu0 (%p125_p5), %v1013_v17  ;;  %708 = vmatprep.subr.bf16.mxu1 (%p125_p5), %v1013_v17  ;;  %v779_v20 = vld [vmem:[#allocation11] sm:$0xff] (%p125_p5)   ;;  %v774_v21 = vld [vmem:[#allocation8 + $0x18] sm:$0xff] (%p125_p5)   ;;  %v780_v22 = vld [vmem:[#allocation11 + $0x8] sm:$0xff] (%p125_p5)  }
  0xa9   :  { %689 = vmatpush3.bf16.msra.mxu0 (%p125_p5), %v771_v16  ;;  %704 = vmatprep.mubr.msk.bf16.mxu0 (%p125_p5), %vm1014_vm0, %v1013_v17  ;;  %v775_v23 = vld [vmem:[#allocation8 + $0x20] sm:$0xff] (%p125_p5)   ;;  %v781_v24 = vld [vmem:[#allocation11 + $0x10] sm:$0xff] (%p125_p5)   ;;  %v776_v25 = vld [vmem:[#allocation8 + $0x28] sm:$0xff] (%p125_p5)   ;;  %s551_s20 = sshll.u32 (%p125_p5), %s1015_s5, 4  ;;  %s552_s20 = int_to_ptr.vmem [resolvable:$true] %s551_s20 }
  0xaa   : > { %s1272_s16 = smov (!%p186_p1, %s185_s16), 0  ;;  %p195_p3 = scmp.gt.s32.totalorder %s194_s21, 0  ;;  %690 = vmatprep.subr.bf16.mxu0 (%p125_p5), %v1013_v17  ;;  %724 = vmatprep.mubr.msk.bf16.mxu1 (%p125_p5), %vm1014_vm0, %v1013_v17  ;;  %v782_v26 = vld [vmem:[#allocation11 + $0x18] sm:$0xff] (%p125_p5)   ;;  %v777_v27 = vld [vmem:[#allocation8 + $0x30] sm:$0xff] (%p125_p5)   ;;  %v783_v28 = vld [vmem:[#allocation11 + $0x20] sm:$0xff] (%p125_p5)  }
  0xab   : > { %p613_p4 = scmp.lt.s32.totalorder %s194_s21, 31  ;;  %s1274_s16 = smov (!%p608_p2, %s1272_s16), 31  ;;  %709 = vmatpush3.bf16.msra.mxu1 (%p125_p5), %v779_v20  ;;  %v778_v29 = vld [vmem:[#allocation8 + $0x38] sm:$0xff] (%p125_p5)   ;;  %v784_v31 = vld [vmem:[#allocation11 + $0x28] sm:$0xff] (%p125_p5)   ;;  %v618_v41 = vld [vmem:[#allocation10] ss:$0 sm:$0xff] (%p125_p5) }
  0xac   : > { %s1276_s21 = smov (!%p195_p3, %s194_s21), 0  ;;  %s190_s22 = scalar_lea.vmem [#allocation5], %s1274_s16  ;;  %710 = vmatprep.subr.bf16.mxu1 (%p125_p5), %v1013_v17  ;;  %v785_v33 = vld [vmem:[#allocation11 + $0x30] sm:$0xff] (%p125_p5)   ;;  %v786_v34 = vld [vmem:[#allocation11 + $0x38] sm:$0xff] (%p125_p5)   ;;  %v787_v35 = vld [vmem:[#allocation14] sm:$0xff] (%p125_p5)  }
  0xad   : > { %v191_v11 = vld [vmem:[%s190_s22] sm:$0x1]  ;;  %s1278_s21 = smov (!%p613_p4, %s1276_s21), 31  ;;  %691 = vmatpush3.bf16.msra.mxu0 (%p125_p5), %v772_v18  ;;  %v788_v36 = vld [vmem:[#allocation14 + $0x8] sm:$0xff] (%p125_p5)   ;;  %v790_v38 = vld [vmem:[#allocation14 + $0x18] sm:$0xff] (%p125_p5)   ;;  %s959_s27 = scalar_lea.vmem (%p125_p5), %s552_s20, 128 }
  0xae   : > { %v192_v12 = vadd.f32 %v191_v11, %v183_v10  ;;  %s199_s23 = scalar_lea.vmem [#allocation5], %s1278_s21  ;;  %127 = sbr.rel (!%p125_p5) target bundleno = 141 (0x8d), region = 92  ;;  %692 = vmatprep.subr.bf16.mxu0 (%p125_p5), %v1013_v17  ;;  %v789_v37 = vld [vmem:[#allocation14 + $0x10] sm:$0xff] (%p125_p5)   ;;  %v791_v39 = vld [vmem:[#allocation14 + $0x20] sm:$0xff] (%p125_p5)   ;;  %v792_v40 = vld [vmem:[#allocation14 + $0x28] sm:$0xff] (%p125_p5)  }
  0xaf   : > { %v200_v13 = vld [vmem:[%s199_s23] sm:$0x1]  ;;  %711 = vmatpush3.bf16.msra.mxu1 (%p125_p5), %v780_v22  ;;  %v794_v50 = vld [vmem:[#allocation14 + $0x38] sm:$0xff] (%p125_p5)   ;;  %v636_v59 = vld [vmem:[#allocation16] ss:$0 sm:$0xff] (%p125_p5)  ;;  %p960_p6 = scmp.ne.s32.totalorder (%p125_p5), %s552_s20, %s959_s27  ;;  %p964_p7 = scmp.lt.s32.totalorder (%p125_p5), %s552_s20, %s552_s20 }
  0xb0   : > { %v201_v14 = vadd.f32 %v200_v13, %v192_v12  ;;  %712 = vmatprep.subr.bf16.mxu1 (%p125_p5), %v1013_v17  ;;  %v793_v49 = vld [vmem:[#allocation14 + $0x30] sm:$0xff] (%p125_p5)   ;;  %v627_v51 = vld [vmem:[#allocation13] ss:$0 sm:$0xff] (%p125_p5)  ;;  %p965_p8 = scmp.lt.s32.totalorder (%p125_p5), %s959_s27, %s959_s27 }
  0xb1   :  { %693 = vmatpush3.bf16.msra.mxu0 (%p125_p5), %v773_v19 }
  0xb2   : > { %v202_v15 = vmul.f32 0.125, %v201_v14  ;;  %694 = vmatprep.subr.bf16.mxu0 (%p125_p5), %v1013_v17  ;;  %p966_p9 = por (%p125_p5), %p965_p8, %p964_p7 }
  0xb3   :  { %713 = vmatpush3.bf16.msra.mxu1 (%p125_p5), %v781_v24 }
  0xb4   : > { %204 = vst [vmem:[%s203_s26] sm:$0x1] %v202_v15  ;;  %714 = vmatprep.subr.bf16.mxu1 (%p125_p5), %v1013_v17  ;;  %p967_p10 = pnand (%p125_p5), %p966_p9, %p960_p6 }
  0xb5   :  { %695 = vmatpush3.bf16.msra.mxu0 %v774_v21 }
  0xb6   :  { %696 = vmatprep.subr.bf16.mxu0 %v1013_v17 }
  0xb7   :  { %715 = vmatpush3.bf16.msra.mxu1 %v782_v26 }
  0xb8   :  { %716 = vmatprep.subr.bf16.mxu1 %v1013_v17 }
  0xb9   :  { %697 = vmatpush3.bf16.msra.mxu0 %v775_v23 }
  0xba   :  { %698 = vmatprep.subr.bf16.mxu0 %v1013_v17 }
  0xbb   :  { %v205_v30 = vld [vmem:[#allocation2] sm:$0xff]  ;;  %717 = vmatpush3.bf16.msra.mxu1 %v783_v28 }
  0xbc   :  { %718 = vmatprep.subr.bf16.mxu1 %v1013_v17  ;;  %v206_v32 = vpack.c.bf16 %v205_v30, %v205_v30 }
  0xbd   :  { %699 = vmatpush3.bf16.msra.mxu0 %v776_v25 }
  0xbe   :  { %700 = vmatprep.subr.bf16.mxu0 %v1013_v17 }
  0xbf   :  { %719 = vmatpush3.bf16.msra.mxu1 %v784_v31 }
  0xc0   :  { %720 = vmatprep.subr.bf16.mxu1 %v1013_v17 }
  0xc1   :  { %701 = vmatpush3.bf16.msra.mxu0 %v777_v27 }
  0xc2   :  { %702 = vmatprep.subr.bf16.mxu0 %v1013_v17 }
  0xc3   :  { %721 = vmatpush3.bf16.msra.mxu1 %v785_v33 }
  0xc4   :  { %722 = vmatprep.subr.bf16.mxu1 %v1013_v17 }
  0xc5   :  { %703 = vmatpush3.bf16.msra.mxu0 %v778_v29 }
  0xc6   :  { %728 = vmatprep.subr.bf16.mxu0 %v1013_v17 }
  0xc7   :  { %723 = vmatpush3.bf16.msra.mxu1 %v786_v34 }
  0xc8   :  { %705 = vmatmul.mubr.bf16.vlgmr.msra.gmra.mrb[0].mxu0 %v206_v32 }
  0xc9   :  { %744 = vmatprep.mubr.msk.bf16.mxu0 %vm1014_vm0, %v1013_v17  ;;  %729 = vmatpush3.bf16.msra.mxu0 %v787_v35 }
  0xca   :  { %730 = vmatprep.subr.bf16.mxu0 %v1013_v17 }
  0xcd   :  { %731 = vmatpush3.bf16.msra.mxu0 %v788_v36 }
  0xce   :  { %732 = vmatprep.subr.bf16.mxu0 %v1013_v17 }
  0xd1   :  { %733 = vmatpush3.bf16.msra.mxu0 %v789_v37 }
  0xd2   :  { %734 = vmatprep.subr.bf16.mxu0 %v1013_v17 }
  0xd5   :  { %735 = vmatpush3.bf16.msra.mxu0 %v790_v38 }
  0xd6   :  { %736 = vmatprep.subr.bf16.mxu0 %v1013_v17 }
  0xd9   :  { %737 = vmatpush3.bf16.msra.mxu0 %v791_v39 }
  0xda   :  { %738 = vmatprep.subr.bf16.mxu0 %v1013_v17 }
  0xdd   :  { %739 = vmatpush3.bf16.msra.mxu0 %v792_v40 }
  0xde   :  { %740 = vmatprep.subr.bf16.mxu0 %v1013_v17 }
  0xe1   :  { %741 = vmatpush3.bf16.msra.mxu0 %v793_v49 }
  0xe2   :  { %742 = vmatprep.subr.bf16.mxu0 %v1013_v17 }
  0xe5   :  { %743 = vmatpush3.bf16.msra.mxu0 %v794_v50 }
 0x19b   :  { %v312_v42 = vpop.f32.mrb[0].mxu0 }
 0x19c   :  { %v313_v43 = vadd.f32 %v618_v41, %v312_v42  ;;  %v706_v44 = vpop.f32.mrb[1].mxu0 }
 0x19d   :  { %v315_v45 = vpop.f32.mrb[2].mxu0 }
 0x19e   :  { %v318_v46 = vmax.f32 %v313_v43, 0.0  ;;  %v707_v47 = vpop.f32.mrb[3].mxu0 }
 0x1a0   :  { %v319_v48 = vpack.c.bf16 %v318_v46, %v318_v46 }
 0x1a2   :  { %725 = vmatmul.mubr.bf16.vlgmr.msra.gmra.mrb[0].mxu1 %v319_v48 }
 0x275   :  { %v425_v52 = vpop.f32.mrb[0].mxu1 }
 0x276   :  { %v426_v53 = vadd.f32 %v627_v51, %v425_v52  ;;  %v726_v54 = vpop.f32.mrb[1].mxu1 }
 0x277   :  { %v428_v55 = vpop.f32.mrb[2].mxu1 }
 0x278   :  { %v431_v56 = vmax.f32 %v426_v53, 0.0  ;;  %v727_v57 = vpop.f32.mrb[3].mxu1 }
 0x27a   :  { %v432_v58 = vpack.c.bf16 %v431_v56, %v431_v56 }
 0x27c   :  { %745 = vmatmul.mubr.bf16.vlgmr.msra.gmra.mrb[4].mxu0 %v432_v58 }
 0x34f   :  { %v538_v60 = vpop.f32.mrb[4].mxu0 }
 0x350   :  { %v539_v61 = vadd.f32 %v636_v59, %v538_v60  ;;  %v746_v62 = vpop.f32.mrb[5].mxu0 }
 0x351   :  { %v541_v63 = vpop.f32.mrb[6].mxu0 }
 0x352   :  { %544 = vst [vmem:[#allocation17] sm:$0xff] %v539_v61  ;;  %v747_v0 = vpop.f32.mrb[7].mxu0 }
 0x353   :  { %970 = shalt.err (!%p967_p10)
}
 0x354   :  { %s971_s7 = scalar_lea.hbm %s1248_s8, 128 }
 0x355   :  { %p972_p11 = scmp.ne.s32.totalorder %s1248_s8, %s971_s7  ;;  %p975_p12 = scmp.lt.u32.totalorder %s971_s7, %s1248_s8 }
 0x357   :  { %p977_p13 = pnand %p975_p12, %p972_p11 }
 0x359   :  { %980 = shalt.err (!%p977_p13)
}
 0x35a   :  { %554 = dma.vmem_to_hbm [thread:$0]  %s552_s20, 128, %s1248_s8, [#allocation7]  }
 0x35b   :  { %995 = dma.done.wait [#allocation7], 128  }
 0x35c   :  { %996 = vsyncadd [#allocation7], 4294967168 }
 0x35d   :  { %558 = vsyncpa [#allocation6], 1 }
 0x35e   :  { %559 = vsyncpa [#allocation9], 1 }
 0x35f   :  { %560 = vsyncpa [#allocation12], 1 }
 0x360   :  { %561 = vsyncpa [#allocation15], 1 }
 0x361   :  { %562 = vsyncpa [#allocation7], 1 }

// kernel: tpu_custom_call.1
= control target key start
LH: loop header
LB: loop body
LE: loop exit
PB: predicated region body
PF: predicated region fallthrough
CT: control target
= control target key end

     0   :  { %s1240_s0 = inlined_call_operand.hbm [shape: s32[64], index: 0, kind: input, shape index: {}]   ;;  %s1241_s1 = inlined_call_operand.hbm [shape: f32[32,128], index: 1, kind: input, shape index: {}]   ;;  %s1242_s2 = inlined_call_operand.hbm [shape: bf16[128,128], index: 2, kind: input, shape index: {}]   ;;  %s1243_s3 = inlined_call_operand.hbm [shape: f32[1,128], index: 3, kind: input, shape index: {}]   ;;  %s1244_s4 = inlined_call_operand.hbm [shape: bf16[128,128], index: 4, kind: input, shape index: {}]   ;;  %s1245_s5 = inlined_call_operand.hbm [shape: f32[1,128], index: 5, kind: input, shape index: {}]   ;;  %s1246_s6 = inlined_call_operand.hbm [shape: bf16[128,128], index: 6, kind: input, shape index: {}]   ;;  %s1247_s7 = inlined_call_operand.hbm [shape: f32[1,128], index: 7, kind: input, shape index: {}]   ;;  %s1248_s8 = inlined_call_operand.hbm [shape: f32[8,128], index: 8, kind: output, shape index: {}]  }
   0x1   :  { %s795_s29 = scalar_lea.hbm %s1240_s0, 16 }
   0x2   :  { %p796_p0 = scmp.ne.s32.totalorder %s1240_s0, %s795_s29  ;;  %p799_p1 = scmp.lt.u32.totalorder %s795_s29, %s1240_s0 }
   0x4   :  { %p801_p2 = pnand %p799_p1, %p796_p0 }
   0x6   :  { %804 = shalt.err (!%p801_p2)  }
   0x7   :  { %s1001_s12 = smov [#allocation4]  }
   0x8   :  { %14 = dma.hbm_to_smem %s1240_s0, 16, %s1001_s12, [#allocation3] }
   0x9   :  { %985 = dma.done.wait [#allocation3], 16 }
   0xa   :  { %986 = vsyncadd [#allocation3], 4294967280 }
   0xb   :  { %16 = sfence }
   0xc   :  { %17 = vsyncpa [#allocation6], 0 }
   0xd   :  { %18 = vsyncpa [#allocation9], 0 }
   0xe   :  { %19 = vsyncpa [#allocation12], 0 }
   0xf   :  { %20 = vsyncpa [#allocation15], 0 }
  0x10   :  { %21 = vsyncpa [#allocation7], 0  ;;  %s1002_s15 = smov [#allocation8]   ;;  %s805_s19 = scalar_lea.hbm %s1242_s2, 1024 }
  0x11   :  { %s39_s16 = sshll.u32 %s1002_s15, 4  ;;  %p806_p3 = scmp.ne.s32.totalorder %s1242_s2, %s805_s19  ;;  %s40_s16 = int_to_ptr.vmem [resolvable:$true] %s39_s16 }
  0x12   :  { %p809_p4 = scmp.lt.u32.totalorder %s805_s19, %s1242_s2 }
  0x14   :  { %p811_p5 = pnand %p809_p4, %p806_p3 }
  0x16   :  { %814 = shalt.err (!%p811_p5)
}
  0x17   :  { %s815_s23 = scalar_lea.vmem %s40_s16, 1024  ;;  %p820_p7 = scmp.lt.s32.totalorder %s40_s16, %s40_s16 }
  0x18   :  { %p816_p6 = scmp.ne.s32.totalorder %s40_s16, %s815_s23  ;;  %p821_p8 = scmp.lt.s32.totalorder %s815_s23, %s815_s23 }
  0x1a   :  { %p822_p9 = por %p821_p8, %p820_p7 }
  0x1c   :  { %p823_p10 = pnand %p822_p9, %p816_p6 }
  0x1e   :  { %826 = shalt.err (!%p823_p10)
}
  0x1f   :  { %s1003_s24 = smov 64   ;;  %s1004_s25 = smov 4  }
  0x20   :  { %45 = dma.hbm_to_vmem [thread:$0]  %s1242_s2, 1024, %s40_s16, [#allocation9], %s1003_s24, %s1003_s24, %s1004_s25  }
  0x21   :  { %s1005_s28 = smov [#allocation11]   ;;  %s1006_s30 = smov [#allocation14]  }
  0x22   :  { %s61_s29 = sshll.u32 %s1005_s28, 4  ;;  %s83_s9 = sshll.u32 %s1006_s30, 4  ;;  %s62_s29 = int_to_ptr.vmem [resolvable:$true] %s61_s29  ;;  %s84_s9 = int_to_ptr.vmem [resolvable:$true] %s83_s9 }
  0x23   :  { %s827_s12 = scalar_lea.hbm %s1244_s4, 1024 }
  0x24   :  { %p828_p11 = scmp.ne.s32.totalorder %s1244_s4, %s827_s12  ;;  %p831_p12 = scmp.lt.u32.totalorder %s827_s12, %s1244_s4 }
  0x26   :  { %p833_p13 = pnand %p831_p12, %p828_p11 }
  0x28   :  { %836 = shalt.err (!%p833_p13)
}
  0x29   :  { %s837_s2 = scalar_lea.vmem %s62_s29, 1024  ;;  %p842_p1 = scmp.lt.s32.totalorder %s62_s29, %s62_s29 }
  0x2a   :  { %p838_p0 = scmp.ne.s32.totalorder %s62_s29, %s837_s2  ;;  %p843_p2 = scmp.lt.s32.totalorder %s837_s2, %s837_s2 }
  0x2c   :  { %p844_p3 = por %p843_p2, %p842_p1 }
  0x2e   :  { %p845_p4 = pnand %p844_p3, %p838_p0 }
  0x30   :  { %848 = shalt.err (!%p845_p4)
}
  0x31   :  { %67 = dma.hbm_to_vmem [thread:$0]  %s1244_s4, 1024, %s62_s29, [#allocation12], %s1003_s24, %s1003_s24, %s1004_s25  }
  0x32   :  { %s849_s21 = scalar_lea.hbm %s1246_s6, 1024 }
  0x33   :  { %p850_p5 = scmp.ne.s32.totalorder %s1246_s6, %s849_s21  ;;  %p853_p6 = scmp.lt.u32.totalorder %s849_s21, %s1246_s6 }
  0x35   :  { %p855_p7 = pnand %p853_p6, %p850_p5 }
  0x37   :  { %858 = shalt.err (!%p855_p7)
}
  0x38   :  { %s859_s27 = scalar_lea.vmem %s84_s9, 1024  ;;  %p864_p9 = scmp.lt.s32.totalorder %s84_s9, %s84_s9 }
  0x39   :  { %p860_p8 = scmp.ne.s32.totalorder %s84_s9, %s859_s27  ;;  %p865_p10 = scmp.lt.s32.totalorder %s859_s27, %s859_s27 }
  0x3b   :  { %p866_p11 = por %p865_p10, %p864_p9 }
  0x3d   :  { %p867_p12 = pnand %p866_p11, %p860_p8 }
  0x3f   :  { %870 = shalt.err (!%p867_p12)
}
  0x40   :  { %89 = dma.hbm_to_vmem [thread:$0]  %s1246_s6, 1024, %s84_s9, [#allocation15], %s1003_s24, %s1003_s24, %s1004_s25  }
  0x41   :  { %s1007_s29 = smov [#allocation5]   ;;  %s871_s12 = scalar_lea.hbm %s1241_s1, 512 }
  0x42   :  { %s27_s30 = sshll.u32 %s1007_s29, 4  ;;  %p872_p13 = scmp.ne.s32.totalorder %s1241_s1, %s871_s12  ;;  %s28_s30 = int_to_ptr.vmem [resolvable:$true] %s27_s30 }
  0x43   :  { %p875_p0 = scmp.lt.u32.totalorder %s871_s12, %s1241_s1 }
  0x45   :  { %p877_p1 = pnand %p875_p0, %p872_p13 }
  0x47   :  { %880 = shalt.err (!%p877_p1)
}
  0x48   :  { %s881_s2 = scalar_lea.vmem %s28_s30, 512  ;;  %p886_p3 = scmp.lt.s32.totalorder %s28_s30, %s28_s30 }
  0x49   :  { %p882_p2 = scmp.ne.s32.totalorder %s28_s30, %s881_s2  ;;  %p887_p4 = scmp.lt.s32.totalorder %s881_s2, %s881_s2 }
  0x4b   :  { %p888_p5 = por %p887_p4, %p886_p3 }
  0x4d   :  { %p889_p6 = pnand %p888_p5, %p882_p2 }
  0x4f   :  { %892 = shalt.err (!%p889_p6)
}
  0x50   :  { %s1008_s6 = smov 128   ;;  %s1009_s24 = smov 8  }
  0x51   :  { %33 = dma.hbm_to_vmem [thread:$0]  %s1241_s1, 512, %s28_s30, [#allocation6], %s1008_s6, %s1008_s6, %s1009_s24  }
  0x52   :  { %s1010_s16 = smov [#allocation10]   ;;  %s1011_s19 = smov [#allocation13]  }
  0x53   :  { %s52_s18 = sshll.u32 %s1010_s16, 4  ;;  %s74_s20 = sshll.u32 %s1011_s19, 4  ;;  %s53_s18 = int_to_ptr.vmem [resolvable:$true] %s52_s18  ;;  %s75_s20 = int_to_ptr.vmem [resolvable:$true] %s74_s20 }
  0x54   :  { %s893_s22 = scalar_lea.hbm %s1243_s3, 16 }
  0x55   :  { %p894_p7 = scmp.ne.s32.totalorder %s1243_s3, %s893_s22  ;;  %p897_p8 = scmp.lt.u32.totalorder %s893_s22, %s1243_s3 }
  0x57   :  { %p899_p9 = pnand %p897_p8, %p894_p7 }
  0x59   :  { %902 = shalt.err (!%p899_p9)
}
  0x5a   :  { %s903_s1 = scalar_lea.vmem %s53_s18, 16  ;;  %s907_s28 = scalar_lea.vmem %s53_s18, 32 }
  0x5b   :  { %p904_p10 = scmp.ne.s32.totalorder %s53_s18, %s903_s1  ;;  %p908_p11 = scmp.lt.s32.totalorder %s53_s18, %s53_s18 }
  0x5c   :  { %p909_p12 = scmp.lt.s32.totalorder %s907_s28, %s903_s1 }
  0x5e   :  { %p910_p13 = por %p909_p12, %p908_p11 }
  0x60   :  { %p911_p0 = pnand %p910_p13, %p904_p10 }
  0x62   :  { %914 = shalt.err (!%p911_p0)
}
  0x63   :  { %55 = dma.hbm_to_vmem [thread:$0]  %s1243_s3, 16, %s53_s18, [#allocation9]  }
  0x64   :  { %s915_s12 = scalar_lea.hbm %s1245_s5, 16 }
  0x65   :  { %p916_p1 = scmp.ne.s32.totalorder %s1245_s5, %s915_s12  ;;  %p919_p2 = scmp.lt.u32.totalorder %s915_s12, %s1245_s5 }
  0x67   :  { %p921_p3 = pnand %p919_p2, %p916_p1 }
  0x69   :  { %924 = shalt.err (!%p921_p3)
}
  0x6a   :  { %s925_s2 = scalar_lea.vmem %s75_s20, 16  ;;  %s929_s6 = scalar_lea.vmem %s75_s20, 32 }
  0x6b   :  { %p926_p4 = scmp.ne.s32.totalorder %s75_s20, %s925_s2  ;;  %p930_p5 = scmp.lt.s32.totalorder %s75_s20, %s75_s20 }
  0x6c   :  { %p931_p6 = scmp.lt.s32.totalorder %s929_s6, %s925_s2 }
  0x6e   :  { %p932_p7 = por %p931_p6, %p930_p5 }
  0x70   :  { %p933_p8 = pnand %p932_p7, %p926_p4 }
  0x72   :  { %936 = shalt.err (!%p933_p8)
}
  0x73   :  { %77 = dma.hbm_to_vmem [thread:$0]  %s1245_s5, 16, %s75_s20, [#allocation12]  }
  0x74   :  { %s1012_s25 = smov [#allocation16]   ;;  %s937_s19 = scalar_lea.hbm %s1247_s7, 16 }
  0x75   :  { %s96_s9 = sshll.u32 %s1012_s25, 4  ;;  %p938_p9 = scmp.ne.s32.totalorder %s1247_s7, %s937_s19  ;;  %s97_s9 = int_to_ptr.vmem [resolvable:$true] %s96_s9 }
  0x76   :  { %p941_p10 = scmp.lt.u32.totalorder %s937_s19, %s1247_s7 }
  0x78   :  { %p943_p11 = pnand %p941_p10, %p938_p9 }
  0x7a   :  { %946 = shalt.err (!%p943_p11)
}
  0x7b   :  { %s947_s26 = scalar_lea.vmem %s97_s9, 16  ;;  %s951_s5 = scalar_lea.vmem %s97_s9, 32 }
  0x7c   :  { %p948_p12 = scmp.ne.s32.totalorder %s97_s9, %s947_s26  ;;  %p952_p13 = scmp.lt.s32.totalorder %s97_s9, %s97_s9 }
  0x7d   :  { %p953_p0 = scmp.lt.s32.totalorder %s951_s5, %s947_s26 }
  0x7f   :  { %p954_p1 = por %p953_p0, %p952_p13 }
  0x81   :  { %p955_p2 = pnand %p954_p1, %p948_p12 }
  0x83   :  { %958 = shalt.err (!%p955_p2)
}
  0x84   :  { %99 = dma.hbm_to_vmem [thread:$0]  %s1247_s7, 16, %s97_s9, [#allocation15]  }
  0x85   :  { %987 = dma.done.wait [#allocation6], 512  }
  0x86   :  { %988 = vsyncadd [#allocation6], 4294966784 }
  0x87   :  { %989 = dma.done.wait [#allocation9], 1040  }
  0x88   :  { %990 = vsyncadd [#allocation9], 4294966256 }
  0x89   :  { %991 = dma.done.wait [#allocation12], 1040  }
  0x8a   :  { %992 = vsyncadd [#allocation12], 4294966256 }
  0x8b   :  { %993 = dma.done.wait [#allocation15], 1040  }
  0x8c   :  { %994 = vsyncadd [#allocation15], 4294966256  ;;  %s1166_s4 = smov 0  }
  0x8d LB: > { %s1172_s1 = sshll.u32 %s999_s4, 3  ;;  %s203_s26 = scalar_lea.vmem [#allocation2], %s999_s4  ;;  %s999_s4 = sphi %s1166_s4, %s128_s4  }
  0x8e   : > { %s131_s7 = sld [smem:[#allocation4 + %s1172_s1]]  ;;  %s139_s28 = sadd.s32 1, %s1172_s1 }
  0x8f   : > { %s140_s29 = sld [smem:[#allocation4 + %s139_s28]]  ;;  %s148_s30 = sadd.s32 2, %s1172_s1 }
  0x90   : > { %s149_s10 = sld [smem:[#allocation4 + %s148_s30]]  ;;  %s157_s11 = sadd.s32 3, %s1172_s1 }
  0x91   : > { %s158_s12 = sld [smem:[#allocation4 + %s157_s11]]  ;;  %s166_s13 = sadd.s32 4, %s1172_s1 }
  0x92   : > { %s1179_s14 = sld [smem:[#allocation4 + %s166_s13]]  ;;  %s175_s15 = sadd.s32 5, %s1172_s1 }
  0x93   : > { %s1182_s17 = sld [smem:[#allocation4 + %s175_s15]]  ;;  %s184_s2 = sadd.s32 6, %s1172_s1 }
  0x94   : > { %p132_p3 = scmp.gt.s32.totalorder %s131_s7, 0  ;;  %p578_p4 = scmp.lt.s32.totalorder %s131_s7, 31 }
  0x95   : > { %p141_p5 = scmp.gt.s32.totalorder %s140_s29, 0  ;;  %p583_p6 = scmp.lt.s32.totalorder %s140_s29, 31 }
  0x96   : > { %s1250_s7 = smov (!%p132_p3, %s131_s7), 0  ;;  %p150_p7 = scmp.gt.s32.totalorder %s149_s10, 0 }
  0x97   : > { %s1252_s29 = smov (!%p141_p5, %s140_s29), 0  ;;  %s1254_s7 = smov (!%p578_p4, %s1250_s7), 31 }
  0x98   : > { %s1256_s29 = smov (!%p583_p6, %s1252_s29), 31  ;;  %p588_p8 = scmp.lt.s32.totalorder %s149_s10, 31 }
  0x99   : > { %s1258_s10 = smov (!%p150_p7, %s149_s10), 0  ;;  %p159_p9 = scmp.gt.s32.totalorder %s158_s12, 0 }
  0x9a   : > { %p593_p10 = scmp.lt.s32.totalorder %s158_s12, 31  ;;  %s136_s6 = scalar_lea.vmem [#allocation5], %s1254_s7 }
  0x9b   : > { %v137_v0 = vld [vmem:[%s136_s6] sm:$0x1]  ;;  %s145_s3 = scalar_lea.vmem [#allocation5], %s1256_s29  ;;  %s1260_s10 = smov (!%p588_p8, %s1258_s10), 31 }
  0x9c   : > { %v146_v1 = vld [vmem:[%s145_s3] sm:$0x1]  ;;  %s1262_s12 = smov (!%p159_p9, %s158_s12), 0  ;;  %p168_p11 = scmp.gt.s32.totalorder %s1179_s14, 0 }
  0x9d   : > { %v147_v2 = vadd.f32 %v146_v1, %v137_v0  ;;  %s1264_s12 = smov (!%p593_p10, %s1262_s12), 31  ;;  %s154_s24 = scalar_lea.vmem [#allocation5], %s1260_s10 }
  0x9e   : > { %v155_v3 = vld [vmem:[%s154_s24] sm:$0x1]  ;;  %s169_s25 = scalar_select %p168_p11, %s1179_s14, 0 }
  0x9f   : > { %p598_p12 = scmp.lt.s32.totalorder %s1179_s14, 31  ;;  %p177_p13 = scmp.gt.s32.totalorder %s1182_s17, 0  ;;  %v156_v4 = vadd.f32 %v155_v3, %v147_v2 }
  0xa0   : > { %p603_p0 = scmp.lt.s32.totalorder %s1182_s17, 31  ;;  %s163_s9 = scalar_lea.vmem [#allocation5], %s1264_s12 }
  0xa1   : > { %s1266_s25 = smov (!%p598_p12, %s169_s25), 31  ;;  %v164_v5 = vld [vmem:[%s163_s9] sm:$0x1]  ;;  %s1268_s17 = smov (!%p177_p13, %s1182_s17), 0 }
  0xa2   : > { %s185_s16 = sld [smem:[#allocation4 + %s184_s2]]  ;;  %s1270_s17 = smov (!%p603_p0, %s1268_s17), 31  ;;  %v165_v6 = vadd.f32 %v164_v5, %v156_v4 }
  0xa3   : > { %s193_s18 = sadd.s32 7, %s1172_s1  ;;  %s172_s19 = scalar_lea.vmem [#allocation5], %s1266_s25 }
  0xa4   : > { %v173_v7 = vld [vmem:[%s172_s19] sm:$0x1]  ;;  %s194_s21 = sld [smem:[#allocation4 + %s193_s18]]  ;;  %s181_s0 = scalar_lea.vmem [#allocation5], %s1270_s17 }
  0xa5   : > { %v174_v8 = vadd.f32 %v173_v7, %v165_v6  ;;  %v182_v9 = vld [vmem:[%s181_s0] sm:$0x1]  ;;  %s128_s4 = sadd.s32 1, %s999_s4  }
  0xa6   : > { %p125_p5 = scmp.ge.s32.totalorder %s128_s4, 8  }
  0xa7   : > { %v183_v10 = vadd.f32 %v182_v9, %v174_v8  ;;  %v771_v16 = vld [vmem:[#allocation8] sm:$0xff] (%p125_p5)   ;;  %v1013_v17 = vmov (%p125_p5), 0.0   ;;  %v772_v18 = vld [vmem:[#allocation8 + $0x8] sm:$0xff] (%p125_p5)   ;;  %vm1014_vm0 = vmmov (%p125_p5), 0   ;;  %v773_v19 = vld [vmem:[#allocation8 + $0x10] sm:$0xff] (%p125_p5)   ;;  %s1015_s5 = smov (%p125_p5), [#allocation17]  }
  0xa8   : > { %p186_p1 = scmp.gt.s32.totalorder %s185_s16, 0  ;;  %p608_p2 = scmp.lt.s32.totalorder %s185_s16, 31  ;;  %688 = vmatprep.subr.bf16.mxu0 (%p125_p5), %v1013_v17  ;;  %708 = vmatprep.subr.bf16.mxu1 (%p125_p5), %v1013_v17  ;;  %v779_v20 = vld [vmem:[#allocation11] sm:$0xff] (%p125_p5)   ;;  %v774_v21 = vld [vmem:[#allocation8 + $0x18] sm:$0xff] (%p125_p5)   ;;  %v780_v22 = vld [vmem:[#allocation11 + $0x8] sm:$0xff] (%p125_p5)  }
  0xa9   :  { %689 = vmatpush3.bf16.msra.mxu0 (%p125_p5), %v771_v16  ;;  %704 = vmatprep.mubr.msk.bf16.mxu0 (%p125_p5), %vm1014_vm0, %v1013_v17  ;;  %v775_v23 = vld [vmem:[#allocation8 + $0x20] sm:$0xff] (%p125_p5)   ;;  %v781_v24 = vld [vmem:[#allocation11 + $0x10] sm:$0xff] (%p125_p5)   ;;  %v776_v25 = vld [vmem:[#allocation8 + $0x28] sm:$0xff] (%p125_p5)   ;;  %s551_s20 = sshll.u32 (%p125_p5), %s1015_s5, 4  ;;  %s552_s20 = int_to_ptr.vmem [resolvable:$true] %s551_s20 }
  0xaa   : > { %s1272_s16 = smov (!%p186_p1, %s185_s16), 0  ;;  %p195_p3 = scmp.gt.s32.totalorder %s194_s21, 0  ;;  %690 = vmatprep.subr.bf16.mxu0 (%p125_p5), %v1013_v17  ;;  %724 = vmatprep.mubr.msk.bf16.mxu1 (%p125_p5), %vm1014_vm0, %v1013_v17  ;;  %v782_v26 = vld [vmem:[#allocation11 + $0x18] sm:$0xff] (%p125_p5)   ;;  %v777_v27 = vld [vmem:[#allocation8 + $0x30] sm:$0xff] (%p125_p5)   ;;  %v783_v28 = vld [vmem:[#allocation11 + $0x20] sm:$0xff] (%p125_p5)  }
  0xab   : > { %p613_p4 = scmp.lt.s32.totalorder %s194_s21, 31  ;;  %s1274_s16 = smov (!%p608_p2, %s1272_s16), 31  ;;  %709 = vmatpush3.bf16.msra.mxu1 (%p125_p5), %v779_v20  ;;  %v778_v29 = vld [vmem:[#allocation8 + $0x38] sm:$0xff] (%p125_p5)   ;;  %v784_v31 = vld [vmem:[#allocation11 + $0x28] sm:$0xff] (%p125_p5)   ;;  %v618_v41 = vld [vmem:[#allocation10] ss:$0 sm:$0xff] (%p125_p5) }
  0xac   : > { %s1276_s21 = smov (!%p195_p3, %s194_s21), 0  ;;  %s190_s22 = scalar_lea.vmem [#allocation5], %s1274_s16  ;;  %710 = vmatprep.subr.bf16.mxu1 (%p125_p5), %v1013_v17  ;;  %v785_v33 = vld [vmem:[#allocation11 + $0x30] sm:$0xff] (%p125_p5)   ;;  %v786_v34 = vld [vmem:[#allocation11 + $0x38] sm:$0xff] (%p125_p5)   ;;  %v787_v35 = vld [vmem:[#allocation14] sm:$0xff] (%p125_p5)  }
  0xad   : > { %v191_v11 = vld [vmem:[%s190_s22] sm:$0x1]  ;;  %s1278_s21 = smov (!%p613_p4, %s1276_s21), 31  ;;  %691 = vmatpush3.bf16.msra.mxu0 (%p125_p5), %v772_v18  ;;  %v788_v36 = vld [vmem:[#allocation14 + $0x8] sm:$0xff] (%p125_p5)   ;;  %v790_v38 = vld [vmem:[#allocation14 + $0x18] sm:$0xff] (%p125_p5)   ;;  %s959_s27 = scalar_lea.vmem (%p125_p5), %s552_s20, 128 }
  0xae   : > { %v192_v12 = vadd.f32 %v191_v11, %v183_v10  ;;  %s199_s23 = scalar_lea.vmem [#allocation5], %s1278_s21  ;;  %127 = sbr.rel (!%p125_p5) target bundleno = 141 (0x8d), region = 92  ;;  %692 = vmatprep.subr.bf16.mxu0 (%p125_p5), %v1013_v17  ;;  %v789_v37 = vld [vmem:[#allocation14 + $0x10] sm:$0xff] (%p125_p5)   ;;  %v791_v39 = vld [vmem:[#allocation14 + $0x20] sm:$0xff] (%p125_p5)   ;;  %v792_v40 = vld [vmem:[#allocation14 + $0x28] sm:$0xff] (%p125_p5)  }
  0xaf   : > { %v200_v13 = vld [vmem:[%s199_s23] sm:$0x1]  ;;  %711 = vmatpush3.bf16.msra.mxu1 (%p125_p5), %v780_v22  ;;  %v794_v50 = vld [vmem:[#allocation14 + $0x38] sm:$0xff] (%p125_p5)   ;;  %v636_v59 = vld [vmem:[#allocation16] ss:$0 sm:$0xff] (%p125_p5)  ;;  %p960_p6 = scmp.ne.s32.totalorder (%p125_p5), %s552_s20, %s959_s27  ;;  %p964_p7 = scmp.lt.s32.totalorder (%p125_p5), %s552_s20, %s552_s20 }
  0xb0   : > { %v201_v14 = vadd.f32 %v200_v13, %v192_v12  ;;  %712 = vmatprep.subr.bf16.mxu1 (%p125_p5), %v1013_v17  ;;  %v793_v49 = vld [vmem:[#allocation14 + $0x30] sm:$0xff] (%p125_p5)   ;;  %v627_v51 = vld [vmem:[#allocation13] ss:$0 sm:$0xff] (%p125_p5)  ;;  %p965_p8 = scmp.lt.s32.totalorder (%p125_p5), %s959_s27, %s959_s27 }
  0xb1   :  { %693 = vmatpush3.bf16.msra.mxu0 (%p125_p5), %v773_v19 }
  0xb2   : > { %v202_v15 = vmul.f32 0.125, %v201_v14  ;;  %694 = vmatprep.subr.bf16.mxu0 (%p125_p5), %v1013_v17  ;;  %p966_p9 = por (%p125_p5), %p965_p8, %p964_p7 }
  0xb3   :  { %713 = vmatpush3.bf16.msra.mxu1 (%p125_p5), %v781_v24 }
  0xb4   : > { %204 = vst [vmem:[%s203_s26] sm:$0x1] %v202_v15  ;;  %714 = vmatprep.subr.bf16.mxu1 (%p125_p5), %v1013_v17  ;;  %p967_p10 = pnand (%p125_p5), %p966_p9, %p960_p6 }
  0xb5   :  { %695 = vmatpush3.bf16.msra.mxu0 %v774_v21 }
  0xb6   :  { %696 = vmatprep.subr.bf16.mxu0 %v1013_v17 }
  0xb7   :  { %715 = vmatpush3.bf16.msra.mxu1 %v782_v26 }
  0xb8   :  { %716 = vmatprep.subr.bf16.mxu1 %v1013_v17 }
  0xb9   :  { %697 = vmatpush3.bf16.msra.mxu0 %v775_v23 }
  0xba   :  { %698 = vmatprep.subr.bf16.mxu0 %v1013_v17 }
  0xbb   :  { %v205_v30 = vld [vmem:[#allocation2] sm:$0xff]  ;;  %717 = vmatpush3.bf16.msra.mxu1 %v783_v28 }
  0xbc   :  { %718 = vmatprep.subr.bf16.mxu1 %v1013_v17  ;;  %v206_v32 = vpack.c.bf16 %v205_v30, %v205_v30 }
  0xbd   :  { %699 = vmatpush3.bf16.msra.mxu0 %v776_v25 }
  0xbe   :  { %700 = vmatprep.subr.bf16.mxu0 %v1013_v17 }
  0xbf   :  { %719 = vmatpush3.bf16.msra.mxu1 %v784_v31 }
  0xc0   :  { %720 = vmatprep.subr.bf16.mxu1 %v1013_v17 }
  0xc1   :  { %701 = vmatpush3.bf16.msra.mxu0 %v777_v27 }
  0xc2   :  { %702 = vmatprep.subr.bf16.mxu0 %v1013_v17 }
  0xc3   :  { %721 = vmatpush3.bf16.msra.mxu1 %v785_v33 }
  0xc4   :  { %722 = vmatprep.subr.bf16.mxu1 %v1013_v17 }
  0xc5   :  { %703 = vmatpush3.bf16.msra.mxu0 %v778_v29 }
  0xc6   :  { %728 = vmatprep.subr.bf16.mxu0 %v1013_v17 }
  0xc7   :  { %723 = vmatpush3.bf16.msra.mxu1 %v786_v34 }
  0xc8   :  { %705 = vmatmul.mubr.bf16.vlgmr.msra.gmra.mrb[0].mxu0 %v206_v32 }
  0xc9   :  { %744 = vmatprep.mubr.msk.bf16.mxu0 %vm1014_vm0, %v1013_v17  ;;  %729 = vmatpush3.bf16.msra.mxu0 %v787_v35 }
  0xca   :  { %730 = vmatprep.subr.bf16.mxu0 %v1013_v17 }
  0xcd   :  { %731 = vmatpush3.bf16.msra.mxu0 %v788_v36 }
  0xce   :  { %732 = vmatprep.subr.bf16.mxu0 %v1013_v17 }
  0xd1   :  { %733 = vmatpush3.bf16.msra.mxu0 %v789_v37 }
  0xd2   :  { %734 = vmatprep.subr.bf16.mxu0 %v1013_v17 }
  0xd5   :  { %735 = vmatpush3.bf16.msra.mxu0 %v790_v38 }
  0xd6   :  { %736 = vmatprep.subr.bf16.mxu0 %v1013_v17 }
  0xd9   :  { %737 = vmatpush3.bf16.msra.mxu0 %v791_v39 }
  0xda   :  { %738 = vmatprep.subr.bf16.mxu0 %v1013_v17 }
  0xdd   :  { %739 = vmatpush3.bf16.msra.mxu0 %v792_v40 }
  0xde   :  { %740 = vmatprep.subr.bf16.mxu0 %v1013_v17 }
  0xe1   :  { %741 = vmatpush3.bf16.msra.mxu0 %v793_v49 }
  0xe2   :  { %742 = vmatprep.subr.bf16.mxu0 %v1013_v17 }
  0xe5   :  { %743 = vmatpush3.bf16.msra.mxu0 %v794_v50 }
 0x19b   :  { %v312_v42 = vpop.f32.mrb[0].mxu0 }
 0x19c   :  { %v313_v43 = vadd.f32 %v618_v41, %v312_v42  ;;  %v706_v44 = vpop.f32.mrb[1].mxu0 }
 0x19d   :  { %v315_v45 = vpop.f32.mrb[2].mxu0 }
 0x19e   :  { %v318_v46 = vmax.f32 %v313_v43, 0.0  ;;  %v707_v47 = vpop.f32.mrb[3].mxu0 }
 0x1a0   :  { %v319_v48 = vpack.c.bf16 %v318_v46, %v318_v46 }
 0x1a2   :  { %725 = vmatmul.mubr.bf16.vlgmr.msra.gmra.mrb[0].mxu1 %v319_v48 }
 0x275   :  { %v425_v52 = vpop.f32.mrb[0].mxu1 }
 0x276   :  { %v426_v53 = vadd.f32 %v627_v51, %v425_v52  ;;  %v726_v54 = vpop.f32.mrb[1].mxu1 }
 0x277   :  { %v428_v55 = vpop.f32.mrb[2].mxu1 }
 0x278   :  { %v431_v56 = vmax.f32 %v426_v53, 0.0  ;;  %v727_v57 = vpop.f32.mrb[3].mxu1 }
 0x27a   :  { %v432_v58 = vpack.c.bf16 %v431_v56, %v431_v56 }
 0x27c   :  { %745 = vmatmul.mubr.bf16.vlgmr.msra.gmra.mrb[4].mxu0 %v432_v58 }
 0x34f   :  { %v538_v60 = vpop.f32.mrb[4].mxu0 }
 0x350   :  { %v539_v61 = vadd.f32 %v636_v59, %v538_v60  ;;  %v746_v62 = vpop.f32.mrb[5].mxu0 }
 0x351   :  { %v541_v63 = vpop.f32.mrb[6].mxu0 }
 0x352   :  { %544 = vst [vmem:[#allocation17] sm:$0xff] %v539_v61  ;;  %v747_v0 = vpop.f32.mrb[7].mxu0 }
 0x353   :  { %970 = shalt.err (!%p967_p10)
}
 0x354   :  { %s971_s7 = scalar_lea.hbm %s1248_s8, 128 }
 0x355   :  { %p972_p11 = scmp.ne.s32.totalorder %s1248_s8, %s971_s7  ;;  %p975_p12 = scmp.lt.u32.totalorder %s971_s7, %s1248_s8 }
 0x357   :  { %p977_p13 = pnand %p975_p12, %p972_p11 }
 0x359   :  { %980 = shalt.err (!%p977_p13)
}
 0x35a   :  { %554 = dma.vmem_to_hbm [thread:$0]  %s552_s20, 128, %s1248_s8, [#allocation7]  }
 0x35b   :  { %995 = dma.done.wait [#allocation7], 128  }
 0x35c   :  { %996 = vsyncadd [#allocation7], 4294967168 }
 0x35d   :  { %558 = vsyncpa [#allocation6], 1 }
 0x35e   :  { %559 = vsyncpa [#allocation9], 1 }
 0x35f   :  { %560 = vsyncpa [#allocation12], 1 }
 0x360   :  { %561 = vsyncpa [#allocation15], 1 }
 0x361   :  { %562 = vsyncpa [#allocation7], 1 }

</bundles_post_ra>
